<compile_context>
chip_gen: v6e
topology: v6e:2x2x1
jax: 0.10.0
libtpu: 0.0.40
codegen_flags: <defaults>
</compile_context>

<pallas_src>
import functools

import jax
import jax.numpy as jnp
from jax.experimental import pallas as pl
from jax.experimental.pallas import tpu as pltpu

LN_EPS = 1e-5          # torch.nn.LayerNorm default
LANE = 128
SUBLANE = 8
NEG_INF = -1e30


def _round_up(x, m):
    return ((x + m - 1) // m) * m


def _layernorm(v, g, b):
    mu = jnp.mean(v, axis=-1, keepdims=True)
    var = jnp.mean((v - mu) ** 2, axis=-1, keepdims=True)
    return (v - mu) * jax.lax.rsqrt(var + LN_EPS) * g + b


def _gelu_tanh(x):
    # TODO(synk): PyTorch nn.GELU defaults to the exact erf formulation; tanh approx used here.
    return 0.5 * x * (1.0 + jnp.tanh(0.7978845608028654 * (x + 0.044715 * x * x * x)))


# --------------------------------------------------------------------------- patch embed + assembly
def _embed_kernel(p_ref, w_ref, b_ref, base_ref, o_ref, *, n_patches, seq_pad):
    # patchify conv (kernel == stride) == matmul over flattened patches; bf16 operands, f32 acc
    emb = jnp.dot(p_ref[0].astype(jnp.bfloat16), w_ref[...],
                  preferred_element_type=jnp.float32) + b_ref[...]          # (N, D)
    # Scatter the patch rows into sequence rows 1..N with a 0/1 placement matmul
    # (avoids unaligned sublane stores; trivial flops vs. the projection itself).
    row = jax.lax.broadcasted_iota(jnp.int32, (seq_pad, n_patches), 0)
    col = jax.lax.broadcasted_iota(jnp.int32, (seq_pad, n_patches), 1)
    placement = (row == col + 1).astype(jnp.float32)                        # (S_pad, N)
    o_ref[0] = base_ref[0] + jnp.dot(placement, emb,
                                     preferred_element_type=jnp.float32)


def patch_embed_assemble(patches, proj_w, proj_b, base):
    """patches: (B, N, K) f32; proj_w: (K, D) bf16; base: (1, S_pad, D) f32 -> (B, S_pad, D) f32."""
    B, N, K = patches.shape
    seq_pad, D = base.shape[1], base.shape[2]
    kernel = functools.partial(_embed_kernel, n_patches=N, seq_pad=seq_pad)
    return pl.pallas_call(
        kernel,
        out_shape=jax.ShapeDtypeStruct((B, seq_pad, D), jnp.float32),
        grid=(B,),
        in_specs=[
            pl.BlockSpec((1, N, K), lambda b: (b, 0, 0)),
            pl.BlockSpec((K, D), lambda b: (0, 0)),
            pl.BlockSpec((1, D), lambda b: (0, 0)),
            pl.BlockSpec((1, seq_pad, D), lambda b: (0, 0, 0)),
        ],
        out_specs=pl.BlockSpec((1, seq_pad, D), lambda b: (b, 0, 0)),
        compiler_params=pltpu.CompilerParams(dimension_semantics=("parallel",)),
    )(patches, proj_w, proj_b, base)


# --------------------------------------------------------------------------- transformer block
def _ln_qkv_kernel(x_ref, g_ref, b_ref, w_ref, bq_ref, o_ref):
    xn = _layernorm(x_ref[0], g_ref[...], b_ref[...])                        # f32
    qkv = jnp.dot(xn.astype(jnp.bfloat16), w_ref[...],
                  preferred_element_type=jnp.float32) + bq_ref[...]
    o_ref[0] = qkv.astype(jnp.bfloat16)


def _attn_mlp_kernel(x_ref, q_ref, k_ref, v_ref, wp_ref, bp_ref,
                     g2_ref, bln2_ref, w1_ref, b1_ref, w2_ref, b2_ref,
                     o_ref, *, n_heads, seq_len):
    x = x_ref[0]                                   # (TQ, D)        f32 residual input
    q = q_ref[0]                                   # (H, TQ, hd)    bf16
    k = k_ref[0]                                   # (H, S_pad, hd) bf16 (resident across q tiles)
    v = v_ref[0]                                   # (H, S_pad, hd) bf16
    tq, d_model = x.shape
    kv_len = k.shape[1]
    hd = d_model // n_heads
    scale = float(hd) ** -0.5

    # ---- multi-head attention: single batched contraction over all heads ----
    s = jnp.einsum("hqd,hkd->hqk", q, k,
                   preferred_element_type=jnp.float32) * scale              # (H, TQ, S_pad)
    if seq_len < kv_len:                                                     # mask padded keys
        kidx = jax.lax.broadcasted_iota(jnp.int32, (1, 1, kv_len), 2)
        s = jnp.where(kidx < seq_len, s, NEG_INF)
    s = s - jnp.max(s, axis=-1, keepdims=True)
    p = jnp.exp(s)
    p = p * pl.reciprocal(jnp.sum(p, axis=-1, keepdims=True), approx=True)   # EUP, not VPU divide
    o = jnp.einsum("hqk,hkd->hqd", p.astype(jnp.bfloat16), v,
                   preferred_element_type=jnp.float32)                       # (H, TQ, hd)
    attn = jnp.concatenate([o[h] for h in range(n_heads)], axis=-1)          # (TQ, D)

    attn = jnp.dot(attn.astype(jnp.bfloat16), wp_ref[...],
                   preferred_element_type=jnp.float32) + bp_ref[...]
    x = x + attn

    # ---- MLP (tiled with the same query tile) ----
    xn2 = _layernorm(x, g2_ref[...], bln2_ref[...])
    h1 = jnp.dot(xn2.astype(jnp.bfloat16), w1_ref[...],
                 preferred_element_type=jnp.float32) + b1_ref[...]
    h1 = _gelu_tanh(h1)
    h2 = jnp.dot(h1.astype(jnp.bfloat16), w2_ref[...],
                 preferred_element_type=jnp.float32) + b2_ref[...]
    o_ref[0] = x + h2


def transformer_block(x, p, *, n_heads, seq_len, tq):
    B, seq_pad, D = x.shape
    d_ff = p["w1"].shape[1]
    hd = D // n_heads
    n_q = seq_pad // tq

    # ---- LayerNorm1 + fused QKV projection, tiled over (batch, seq tiles) ----
    qkv = pl.pallas_call(
        _ln_qkv_kernel,
        out_shape=jax.ShapeDtypeStruct((B, seq_pad, 3 * D), jnp.bfloat16),
        grid=(B, n_q),
        in_specs=[
            pl.BlockSpec((1, tq, D), lambda b, s: (b, s, 0)),
            pl.BlockSpec((1, D), lambda b, s: (0, 0)),
            pl.BlockSpec((1, D), lambda b, s: (0, 0)),
            pl.BlockSpec((D, 3 * D), lambda b, s: (0, 0)),
            pl.BlockSpec((1, 3 * D), lambda b, s: (0, 0)),
        ],
        out_specs=pl.BlockSpec((1, tq, 3 * D), lambda b, s: (b, s, 0)),
        compiler_params=pltpu.CompilerParams(
            dimension_semantics=("parallel", "parallel")),
    )(x, p["ln1_g"], p["ln1_b"], p["wqkv"], p["bqkv"])

    # Head-major q/k/v (B, H, S_pad, hd) so the attention kernel uses one batched einsum
    # over all heads (no per-head lane slicing inside the kernel). Done with cheap XLA ops.
    qkv_h = qkv.reshape(B, seq_pad, 3, n_heads, hd).transpose(0, 2, 3, 1, 4)
    q, k, v = qkv_h[:, 0], qkv_h[:, 1], qkv_h[:, 2]

    kernel = functools.partial(_attn_mlp_kernel, n_heads=n_heads, seq_len=seq_len)
    return pl.pallas_call(
        kernel,
        out_shape=jax.ShapeDtypeStruct((B, seq_pad, D), jnp.float32),
        grid=(B, n_q),
        in_specs=[
            pl.BlockSpec((1, tq, D), lambda b, s: (b, s, 0)),                    # residual x tile
            pl.BlockSpec((1, n_heads, tq, hd), lambda b, s: (b, 0, s, 0)),       # q tile
            pl.BlockSpec((1, n_heads, seq_pad, hd), lambda b, s: (b, 0, 0, 0)),  # k (full seq)
            pl.BlockSpec((1, n_heads, seq_pad, hd), lambda b, s: (b, 0, 0, 0)),  # v (full seq)
            pl.BlockSpec((D, D), lambda b, s: (0, 0)),                           # wproj (bf16)
            pl.BlockSpec((1, D), lambda b, s: (0, 0)),                           # bproj
            pl.BlockSpec((1, D), lambda b, s: (0, 0)),                           # ln2_g
            pl.BlockSpec((1, D), lambda b, s: (0, 0)),                           # ln2_b
            pl.BlockSpec((D, d_ff), lambda b, s: (0, 0)),                        # w1 (bf16)
            pl.BlockSpec((1, d_ff), lambda b, s: (0, 0)),                        # b1
            pl.BlockSpec((d_ff, D), lambda b, s: (0, 0)),                        # w2 (bf16)
            pl.BlockSpec((1, D), lambda b, s: (0, 0)),                           # b2
        ],
        out_specs=pl.BlockSpec((1, tq, D), lambda b, s: (b, s, 0)),
        compiler_params=pltpu.CompilerParams(
            dimension_semantics=("parallel", "parallel")),
    )(x, q, k, v, p["wproj"], p["bproj"], p["ln2_g"], p["ln2_b"],
      p["w1"], p["b1"], p["w2"], p["b2"])


# --------------------------------------------------------------------------- final norm + head
def _head_kernel(x_ref, g_ref, b_ref, wh_ref, bh_ref, o_ref):
    xn = _layernorm(x_ref[...], g_ref[...], b_ref[...])
    o_ref[...] = jnp.dot(xn, wh_ref[...], preferred_element_type=jnp.float32) + bh_ref[...]


def head_final(x_cls, g, b, wh, bh):
    """x_cls: (B, D) cls tokens only; wh/bh already padded to a multiple of 128 classes."""
    B, D = x_cls.shape
    n_out = wh.shape[1]
    return pl.pallas_call(
        _head_kernel,
        out_shape=jax.ShapeDtypeStruct((B, n_out), jnp.float32),
        grid=(1,),
        in_specs=[
            pl.BlockSpec((B, D), lambda i: (0, 0)),
            pl.BlockSpec((1, D), lambda i: (0, 0)),
            pl.BlockSpec((1, D), lambda i: (0, 0)),
            pl.BlockSpec((D, n_out), lambda i: (0, 0)),
            pl.BlockSpec((1, n_out), lambda i: (0, 0)),
        ],
        out_specs=pl.BlockSpec((B, n_out), lambda i: (0, 0)),
    )(x_cls, g, b, wh, bh)


# --------------------------------------------------------------------------- glue / params
def extract_patches(im, ph, pw):
    """NCHW image -> (B, num_patches, C*ph*pw), row-major over (grid_h, grid_w),
    inner flattening order (C, ph, pw) to match PyTorch Conv2d weight layout."""
    B, C, H, W = im.shape
    gh, gw = H // ph, W // pw
    x = im.reshape(B, C, gh, ph, gw, pw)
    x = jnp.transpose(x, (0, 2, 4, 1, 3, 5))        # (B, gh, gw, C, ph, pw)
    return x.reshape(B, gh * gw, C * ph * pw)


def _seq_config(num_patches, n_cls):
    seq_len = 1 + num_patches + n_cls + 2           # [cls] + patches + cls_emb tokens
    if seq_len >= LANE:
        seq_pad = _round_up(seq_len, LANE)
        tq = LANE
    else:
        seq_pad = _round_up(seq_len, SUBLANE)
        tq = seq_pad
    return seq_len, seq_pad, tq


def init_params(key, *, image_size, patch_size, channels, d_model, d_ff, n_heads,
                n_layers, n_cls):
    gh, gw = image_size[0] // patch_size[0], image_size[1] // patch_size[1]
    num_patches = gh * gw
    K = channels * patch_size[0] * patch_size[1]
    n_cls_pad = _round_up(n_cls, LANE)
    keys = jax.random.split(key, 8 + n_layers)

    def nrm(k, shape, std=0.02):
        return jax.random.normal(k, shape, jnp.float32) * std

    params = {
        # matmul weights are stored in bf16 (operands); biases / LN params stay f32
        "proj_w": nrm(keys[0], (K, d_model)).astype(jnp.bfloat16),
        "proj_b": jnp.zeros((1, d_model), jnp.float32),
        "cls_token": nrm(keys[1], (1, 1, d_model)),
        "pos_embed": nrm(keys[2], (1, num_patches + 1, d_model)),
        "cls_emb": jax.random.normal(keys[3], (1, n_cls + 2, d_model), jnp.float32),
        "norm_g": jnp.ones((1, d_model), jnp.float32),
        "norm_b": jnp.zeros((1, d_model), jnp.float32),
        # classifier weights padded to a lane-dense (multiple of 128) output width
        "head_w": jnp.zeros((d_model, n_cls_pad), jnp.float32)
                     .at[:, :n_cls].set(nrm(keys[4], (d_model, n_cls))),
        "head_b": jnp.zeros((1, n_cls_pad), jnp.float32),
        "blocks": [],
    }
    for i in range(n_layers):
        bk = jax.random.split(keys[8 + i], 4)
        params["blocks"].append({
            "ln1_g": jnp.ones((1, d_model), jnp.float32),
            "ln1_b": jnp.zeros((1, d_model), jnp.float32),
            "wqkv": nrm(bk[0], (d_model, 3 * d_model)).astype(jnp.bfloat16),
            "bqkv": jnp.zeros((1, 3 * d_model), jnp.float32),
            "wproj": nrm(bk[1], (d_model, d_model)).astype(jnp.bfloat16),
            "bproj": jnp.zeros((1, d_model), jnp.float32),
            "ln2_g": jnp.ones((1, d_model), jnp.float32),
            "ln2_b": jnp.zeros((1, d_model), jnp.float32),
            "w1": nrm(bk[2], (d_model, d_ff)).astype(jnp.bfloat16),
            "b1": jnp.zeros((1, d_ff), jnp.float32),
            "w2": nrm(bk[3], (d_ff, d_model)).astype(jnp.bfloat16),
            "b2": jnp.zeros((1, d_model), jnp.float32),
        })
    return params


def vit_forward(im, params, *, patch_size, n_heads, n_cls):
    ph, pw = patch_size
    d_model = params["proj_b"].shape[-1]

    patches = extract_patches(im, ph, pw)                   # (B, N, K)
    N = patches.shape[1]
    seq_len, seq_pad, tq = _seq_config(N, n_cls)

    # Static (token + positional) part of the padded sequence, parameter-sized only:
    #   row 0             : cls_token + pos_embed[0]
    #   rows 1..N         : pos_embed[1..N]     (patch embedding added in-kernel)
    #   rows N+1..S-1     : 2 * cls_emb         (cls_emb token + cls_emb reused as pos, per spec)
    #   rows S..seq_pad-1 : zeros               (attention-masked padding)
    pos = params["pos_embed"]
    base = jnp.concatenate(
        [params["cls_token"] + pos[:, :1], pos[:, 1:], 2.0 * params["cls_emb"]], axis=1)
    base = jnp.pad(base, ((0, 0), (0, seq_pad - seq_len), (0, 0)))

    # patch embedding + token assembly + positional add, fused in one kernel
    x = patch_embed_assemble(patches, params["proj_w"], params["proj_b"], base)

    # self.dropout: identity at inference
    for blk in params["blocks"]:
        x = transformer_block(x, blk, n_heads=n_heads, seq_len=seq_len, tq=tq)

    # final LayerNorm + head on the cls token only (non-distilled path)
    logits = head_final(x[:, 0, :], params["norm_g"], params["norm_b"],
                        params["head_w"], params["head_b"])
    return logits[:, :n_cls]


if __name__ == "__main__":
    image_size = (16, 16)
    patch_size = (8, 8)
    channels = 4
    d_model, d_ff, n_heads, n_layers, n_cls = 32, 64, 4, 2, 6

    key = jax.random.PRNGKey(0)
    k_img, k_par = jax.random.split(key)
    im = jax.random.normal(k_img, (2, channels, *image_size), jnp.float32)

    params = init_params(
        k_par, image_size=image_size, patch_size=patch_size, channels=channels,
        d_model=d_model, d_ff=d_ff, n_heads=n_heads, n_layers=n_layers, n_cls=n_cls,
    )

    fwd = jax.jit(functools.partial(vit_forward, patch_size=patch_size,
                                    n_heads=n_heads, n_cls=n_cls))
    logits = jax.block_until_ready(fwd(im, params))
    assert logits.shape == (2, n_cls), logits.shape
    assert bool(jnp.all(jnp.isfinite(logits)))
    print("KERNEL_OK")
</pallas_src>

<mosaic_0001>
module attributes {stable_mosaic.version = 11 : i64} {
  func.func @_embed_kernel(%arg0: i32, %arg1: memref<1x4x256xf32, #tpu.memory_space<vmem>>, %arg2: memref<256x32xbf16, #tpu.memory_space<vmem>>, %arg3: memref<1x32xf32, #tpu.memory_space<vmem>>, %arg4: memref<1x16x32xf32, #tpu.memory_space<vmem>>, %arg5: memref<1x16x32xf32, #tpu.memory_space<vmem>>) attributes {dimension_semantics = [#tpu.dimension_semantics<parallel>], iteration_bounds = array<i64: 2>, scalar_prefetch = 0 : i64, scratch_operands = 0 : i64, tpu.core_type = #tpu.core_type<tc>, window_params = [{transform_indices = @transform_0, window_bounds = array<i64: 1, 4, 256>}, {pipeline_mode = #tpu.pipeline_mode<synchronous>, transform_indices = @transform_1, window_bounds = array<i64: 256, 32>}, {pipeline_mode = #tpu.pipeline_mode<synchronous>, transform_indices = @transform_2, window_bounds = array<i64: 1, 32>}, {pipeline_mode = #tpu.pipeline_mode<synchronous>, transform_indices = @transform_3, window_bounds = array<i64: 1, 16, 32>}, {transform_indices = @transform_4, window_bounds = array<i64: 1, 16, 32>}]} {
    %c0 = arith.constant 0 : index
    %c0_0 = arith.constant 0 : index
    %c0_1 = arith.constant 0 : index
    %0 = vector.load %arg1[%c0, %c0_0, %c0_1] : memref<1x4x256xf32, #tpu.memory_space<vmem>>, vector<1x4x256xf32>
    %1 = vector.shape_cast %0 : vector<1x4x256xf32> to vector<4x256xf32>
    %2 = arith.truncf %1 : vector<4x256xf32> to vector<4x256xbf16>
    %c0_2 = arith.constant 0 : index
    %c0_3 = arith.constant 0 : index
    %3 = vector.load %arg2[%c0_2, %c0_3] : memref<256x32xbf16, #tpu.memory_space<vmem>>, vector<256x32xbf16>
    %cst = arith.constant dense<0.000000e+00> : vector<4x32xf32>
    %4 = tpu.matmul %2, %3, %cst {dimension_numbers = #tpu.dot_dimension_numbers<[1], [0], [0], [1], [0, 0, 1, 1], [], []>} : vector<4x256xbf16>, vector<256x32xbf16>, vector<4x32xf32> -> vector<4x32xf32>
    %c0_4 = arith.constant 0 : index
    %c0_5 = arith.constant 0 : index
    %5 = vector.load %arg3[%c0_4, %c0_5] : memref<1x32xf32, #tpu.memory_space<vmem>>, vector<1x32xf32>
    %6 = vector.broadcast %5 : vector<1x32xf32> to vector<4x32xf32>
    %7 = arith.addf %4, %6 : vector<4x32xf32>
    %8 = tpu.iota {dimensions = array<i32: 0>} : vector<16x4xi32>
    %9 = tpu.iota {dimensions = array<i32: 1>} : vector<16x4xi32>
    %c1_i32 = arith.constant 1 : i32
    %10 = vector.broadcast %c1_i32 : i32 to vector<16x4xi32>
    %11 = arith.addi %9, %10 : vector<16x4xi32>
    %12 = arith.cmpi eq, %8, %11 : vector<16x4xi32>
    %13 = arith.extui %12 : vector<16x4xi1> to vector<16x4xi32>
    %14 = arith.sitofp %13 : vector<16x4xi32> to vector<16x4xf32>
    %c0_6 = arith.constant 0 : index
    %c0_7 = arith.constant 0 : index
    %c0_8 = arith.constant 0 : index
    %15 = vector.load %arg4[%c0_6, %c0_7, %c0_8] : memref<1x16x32xf32, #tpu.memory_space<vmem>>, vector<1x16x32xf32>
    %16 = vector.shape_cast %15 : vector<1x16x32xf32> to vector<16x32xf32>
    %cst_9 = arith.constant dense<0.000000e+00> : vector<16x32xf32>
    %17 = tpu.matmul %14, %7, %cst_9 {dimension_numbers = #tpu.dot_dimension_numbers<[1], [0], [0], [1], [0, 0, 1, 1], [], []>} : vector<16x4xf32>, vector<4x32xf32>, vector<16x32xf32> -> vector<16x32xf32>
    %18 = arith.addf %16, %17 : vector<16x32xf32>
    %c0_10 = arith.constant 0 : index
    %c0_11 = arith.constant 0 : index
    %c0_12 = arith.constant 0 : index
    %19 = vector.load %arg5[%c0_10, %c0_11, %c0_12] : memref<1x16x32xf32, #tpu.memory_space<vmem>>, vector<1x16x32xf32>
    %20 = vector.shape_cast %19 : vector<1x16x32xf32> to vector<16x32xf32>
    %21 = vector.shape_cast %18 : vector<16x32xf32> to vector<1x16x32xf32>
    tpu.vector_store %arg5[%c0_10, %c0_11, %c0_12], %21 {strides = array<i32>} : memref<1x16x32xf32, #tpu.memory_space<vmem>>, vector<1x16x32xf32>,
    return
  }
  func.func @transform_0(%arg0: i32) -> (i32, i32, i32) {
    %c0_i32 = arith.constant 0 : i32
    %c0_i32_0 = arith.constant 0 : i32
    %c0_i32_1 = arith.constant 0 : i32
    return %arg0, %c0_i32, %c0_i32_0 : i32, i32, i32
  }
  func.func @transform_1(%arg0: i32) -> (i32, i32) {
    %c0_i32 = arith.constant 0 : i32
    %c0_i32_0 = arith.constant 0 : i32
    %c0_i32_1 = arith.constant 0 : i32
    return %c0_i32, %c0_i32_0 : i32, i32
  }
  func.func @transform_2(%arg0: i32) -> (i32, i32) {
    %c0_i32 = arith.constant 0 : i32
    %c0_i32_0 = arith.constant 0 : i32
    %c0_i32_1 = arith.constant 0 : i32
    return %c0_i32, %c0_i32_0 : i32, i32
  }
  func.func @transform_3(%arg0: i32) -> (i32, i32, i32) {
    %c0_i32 = arith.constant 0 : i32
    %c0_i32_0 = arith.constant 0 : i32
    %c0_i32_1 = arith.constant 0 : i32
    %c0_i32_2 = arith.constant 0 : i32
    return %c0_i32, %c0_i32_0, %c0_i32_1 : i32, i32, i32
  }
  func.func @transform_4(%arg0: i32) -> (i32, i32, i32) {
    %c0_i32 = arith.constant 0 : i32
    %c0_i32_0 = arith.constant 0 : i32
    %c0_i32_1 = arith.constant 0 : i32
    return %arg0, %c0_i32, %c0_i32_0 : i32, i32, i32
  }
}

module attributes {stable_mosaic.version = 11 : i64} {
  func.func @_ln_qkv_kernel(%arg0: i32, %arg1: i32, %arg2: memref<1x16x32xf32, #tpu.memory_space<vmem>>, %arg3: memref<1x32xf32, #tpu.memory_space<vmem>>, %arg4: memref<1x32xf32, #tpu.memory_space<vmem>>, %arg5: memref<32x96xbf16, #tpu.memory_space<vmem>>, %arg6: memref<1x96xf32, #tpu.memory_space<vmem>>, %arg7: memref<1x16x96xbf16, #tpu.memory_space<vmem>>) attributes {dimension_semantics = [#tpu.dimension_semantics<parallel>, #tpu.dimension_semantics<parallel>], iteration_bounds = array<i64: 2, 1>, scalar_prefetch = 0 : i64, scratch_operands = 0 : i64, tpu.core_type = #tpu.core_type<tc>, window_params = [{transform_indices = @transform_0, window_bounds = array<i64: 1, 16, 32>}, {pipeline_mode = #tpu.pipeline_mode<synchronous>, transform_indices = @transform_1, window_bounds = array<i64: 1, 32>}, {pipeline_mode = #tpu.pipeline_mode<synchronous>, transform_indices = @transform_2, window_bounds = array<i64: 1, 32>}, {pipeline_mode = #tpu.pipeline_mode<synchronous>, transform_indices = @transform_3, window_bounds = array<i64: 32, 96>}, {pipeline_mode = #tpu.pipeline_mode<synchronous>, transform_indices = @transform_4, window_bounds = array<i64: 1, 96>}, {transform_indices = @transform_5, window_bounds = array<i64: 1, 16, 96>}]} {
    %c0 = arith.constant 0 : index
    %c0_0 = arith.constant 0 : index
    %c0_1 = arith.constant 0 : index
    %0 = vector.load %arg2[%c0, %c0_0, %c0_1] : memref<1x16x32xf32, #tpu.memory_space<vmem>>, vector<1x16x32xf32>
    %1 = vector.shape_cast %0 : vector<1x16x32xf32> to vector<16x32xf32>
    %c0_2 = arith.constant 0 : index
    %c0_3 = arith.constant 0 : index
    %2 = vector.load %arg3[%c0_2, %c0_3] : memref<1x32xf32, #tpu.memory_space<vmem>>, vector<1x32xf32>
    %c0_4 = arith.constant 0 : index
    %c0_5 = arith.constant 0 : index
    %3 = vector.load %arg4[%c0_4, %c0_5] : memref<1x32xf32, #tpu.memory_space<vmem>>, vector<1x32xf32>
    %cst = arith.constant dense<0.000000e+00> : vector<16xf32>
    %4 = vector.multi_reduction <add>, %1, %cst [1] : vector<16x32xf32> to vector<16xf32>
    %5 = vector.shape_cast %4 : vector<16xf32> to vector<16x1xf32>
    %cst_6 = arith.constant 3.200000e+01 : f32
    %6 = vector.broadcast %cst_6 : f32 to vector<16x1xf32>
    %7 = arith.divf %5, %6 : vector<16x1xf32>
    %8 = vector.broadcast %7 : vector<16x1xf32> to vector<16x32xf32>
    %9 = arith.subf %1, %8 : vector<16x32xf32>
    %10 = arith.mulf %9, %9 : vector<16x32xf32>
    %cst_7 = arith.constant dense<0.000000e+00> : vector<16xf32>
    %11 = vector.multi_reduction <add>, %10, %cst_7 [1] : vector<16x32xf32> to vector<16xf32>
    %12 = vector.shape_cast %11 : vector<16xf32> to vector<16x1xf32>
    %cst_8 = arith.constant 3.200000e+01 : f32
    %13 = vector.broadcast %cst_8 : f32 to vector<16x1xf32>
    %14 = arith.divf %12, %13 : vector<16x1xf32>
    %15 = vector.broadcast %7 : vector<16x1xf32> to vector<16x32xf32>
    %16 = arith.subf %1, %15 : vector<16x32xf32>
    %cst_9 = arith.constant 9.99999974E-6 : f32
    %17 = vector.broadcast %cst_9 : f32 to vector<16x1xf32>
    %18 = arith.addf %14, %17 : vector<16x1xf32>
    %19 = math.rsqrt %18 : vector<16x1xf32>
    %20 = vector.broadcast %19 : vector<16x1xf32> to vector<16x32xf32>
    %21 = arith.mulf %16, %20 : vector<16x32xf32>
    %22 = vector.broadcast %2 : vector<1x32xf32> to vector<16x32xf32>
    %23 = arith.mulf %21, %22 : vector<16x32xf32>
    %24 = vector.broadcast %3 : vector<1x32xf32> to vector<16x32xf32>
    %25 = arith.addf %23, %24 : vector<16x32xf32>
    %26 = arith.truncf %25 : vector<16x32xf32> to vector<16x32xbf16>
    %c0_10 = arith.constant 0 : index
    %c0_11 = arith.constant 0 : index
    %27 = vector.load %arg5[%c0_10, %c0_11] : memref<32x96xbf16, #tpu.memory_space<vmem>>, vector<32x96xbf16>
    %cst_12 = arith.constant dense<0.000000e+00> : vector<16x96xf32>
    %28 = tpu.matmul %26, %27, %cst_12 {dimension_numbers = #tpu.dot_dimension_numbers<[1], [0], [0], [1], [0, 0, 1, 1], [], []>} : vector<16x32xbf16>, vector<32x96xbf16>, vector<16x96xf32> -> vector<16x96xf32>
    %c0_13 = arith.constant 0 : index
    %c0_14 = arith.constant 0 : index
    %29 = vector.load %arg6[%c0_13, %c0_14] : memref<1x96xf32, #tpu.memory_space<vmem>>, vector<1x96xf32>
    %30 = vector.broadcast %29 : vector<1x96xf32> to vector<16x96xf32>
    %31 = arith.addf %28, %30 : vector<16x96xf32>
    %32 = arith.truncf %31 : vector<16x96xf32> to vector<16x96xbf16>
    %c0_15 = arith.constant 0 : index
    %c0_16 = arith.constant 0 : index
    %c0_17 = arith.constant 0 : index
    %33 = vector.load %arg7[%c0_15, %c0_16, %c0_17] : memref<1x16x96xbf16, #tpu.memory_space<vmem>>, vector<1x16x96xbf16>
    %34 = vector.shape_cast %33 : vector<1x16x96xbf16> to vector<16x96xbf16>
    %35 = vector.shape_cast %32 : vector<16x96xbf16> to vector<1x16x96xbf16>
    tpu.vector_store %arg7[%c0_15, %c0_16, %c0_17], %35 {strides = array<i32>} : memref<1x16x96xbf16, #tpu.memory_space<vmem>>, vector<1x16x96xbf16>,
    return
  }
  func.func @transform_0(%arg0: i32, %arg1: i32) -> (i32, i32, i32) {
    %c0_i32 = arith.constant 0 : i32
    %c0_i32_0 = arith.constant 0 : i32
    return %arg0, %arg1, %c0_i32 : i32, i32, i32
  }
  func.func @transform_1(%arg0: i32, %arg1: i32) -> (i32, i32) {
    %c0_i32 = arith.constant 0 : i32
    %c0_i32_0 = arith.constant 0 : i32
    %c0_i32_1 = arith.constant 0 : i32
    return %c0_i32, %c0_i32_0 : i32, i32
  }
  func.func @transform_2(%arg0: i32, %arg1: i32) -> (i32, i32) {
    %c0_i32 = arith.constant 0 : i32
    %c0_i32_0 = arith.constant 0 : i32
    %c0_i32_1 = arith.constant 0 : i32
    return %c0_i32, %c0_i32_0 : i32, i32
  }
  func.func @transform_3(%arg0: i32, %arg1: i32) -> (i32, i32) {
    %c0_i32 = arith.constant 0 : i32
    %c0_i32_0 = arith.constant 0 : i32
    %c0_i32_1 = arith.constant 0 : i32
    return %c0_i32, %c0_i32_0 : i32, i32
  }
  func.func @transform_4(%arg0: i32, %arg1: i32) -> (i32, i32) {
    %c0_i32 = arith.constant 0 : i32
    %c0_i32_0 = arith.constant 0 : i32
    %c0_i32_1 = arith.constant 0 : i32
    return %c0_i32, %c0_i32_0 : i32, i32
  }
  func.func @transform_5(%arg0: i32, %arg1: i32) -> (i32, i32, i32) {
    %c0_i32 = arith.constant 0 : i32
    %c0_i32_0 = arith.constant 0 : i32
    return %arg0, %arg1, %c0_i32 : i32, i32, i32
  }
}

module attributes {stable_mosaic.version = 11 : i64} {
  func.func @_head_kernel(%arg0: i32, %arg1: memref<2x32xf32, #tpu.memory_space<vmem>>, %arg2: memref<1x32xf32, #tpu.memory_space<vmem>>, %arg3: memref<1x32xf32, #tpu.memory_space<vmem>>, %arg4: memref<32x128xf32, #tpu.memory_space<vmem>>, %arg5: memref<1x128xf32, #tpu.memory_space<vmem>>, %arg6: memref<2x128xf32, #tpu.memory_space<vmem>>) attributes {dimension_semantics = [#tpu.dimension_semantics<arbitrary>], iteration_bounds = array<i64: 1>, scalar_prefetch = 0 : i64, scratch_operands = 0 : i64, tpu.core_type = #tpu.core_type<tc>, window_params = [{pipeline_mode = #tpu.pipeline_mode<synchronous>, transform_indices = @transform_0, window_bounds = array<i64: 2, 32>}, {pipeline_mode = #tpu.pipeline_mode<synchronous>, transform_indices = @transform_1, window_bounds = array<i64: 1, 32>}, {pipeline_mode = #tpu.pipeline_mode<synchronous>, transform_indices = @transform_2, window_bounds = array<i64: 1, 32>}, {pipeline_mode = #tpu.pipeline_mode<synchronous>, transform_indices = @transform_3, window_bounds = array<i64: 32, 128>}, {pipeline_mode = #tpu.pipeline_mode<synchronous>, transform_indices = @transform_4, window_bounds = array<i64: 1, 128>}, {pipeline_mode = #tpu.pipeline_mode<synchronous>, transform_indices = @transform_5, window_bounds = array<i64: 2, 128>}]} {
    %c0 = arith.constant 0 : index
    %c0_0 = arith.constant 0 : index
    %0 = vector.load %arg1[%c0, %c0_0] : memref<2x32xf32, #tpu.memory_space<vmem>>, vector<2x32xf32>
    %c0_1 = arith.constant 0 : index
    %c0_2 = arith.constant 0 : index
    %1 = vector.load %arg2[%c0_1, %c0_2] : memref<1x32xf32, #tpu.memory_space<vmem>>, vector<1x32xf32>
    %c0_3 = arith.constant 0 : index
    %c0_4 = arith.constant 0 : index
    %2 = vector.load %arg3[%c0_3, %c0_4] : memref<1x32xf32, #tpu.memory_space<vmem>>, vector<1x32xf32>
    %cst = arith.constant dense<0.000000e+00> : vector<2xf32>
    %3 = vector.multi_reduction <add>, %0, %cst [1] : vector<2x32xf32> to vector<2xf32>
    %4 = vector.shape_cast %3 : vector<2xf32> to vector<2x1xf32>
    %cst_5 = arith.constant 3.200000e+01 : f32
    %5 = vector.broadcast %cst_5 : f32 to vector<2x1xf32>
    %6 = arith.divf %4, %5 : vector<2x1xf32>
    %7 = vector.broadcast %6 : vector<2x1xf32> to vector<2x32xf32>
    %8 = arith.subf %0, %7 : vector<2x32xf32>
    %9 = arith.mulf %8, %8 : vector<2x32xf32>
    %cst_6 = arith.constant dense<0.000000e+00> : vector<2xf32>
    %10 = vector.multi_reduction <add>, %9, %cst_6 [1] : vector<2x32xf32> to vector<2xf32>
    %11 = vector.shape_cast %10 : vector<2xf32> to vector<2x1xf32>
    %cst_7 = arith.constant 3.200000e+01 : f32
    %12 = vector.broadcast %cst_7 : f32 to vector<2x1xf32>
    %13 = arith.divf %11, %12 : vector<2x1xf32>
    %14 = vector.broadcast %6 : vector<2x1xf32> to vector<2x32xf32>
    %15 = arith.subf %0, %14 : vector<2x32xf32>
    %cst_8 = arith.constant 9.99999974E-6 : f32
    %16 = vector.broadcast %cst_8 : f32 to vector<2x1xf32>
    %17 = arith.addf %13, %16 : vector<2x1xf32>
    %18 = math.rsqrt %17 : vector<2x1xf32>
    %19 = vector.broadcast %18 : vector<2x1xf32> to vector<2x32xf32>
    %20 = arith.mulf %15, %19 : vector<2x32xf32>
    %21 = vector.broadcast %1 : vector<1x32xf32> to vector<2x32xf32>
    %22 = arith.mulf %20, %21 : vector<2x32xf32>
    %23 = vector.broadcast %2 : vector<1x32xf32> to vector<2x32xf32>
    %24 = arith.addf %22, %23 : vector<2x32xf32>
    %c0_9 = arith.constant 0 : index
    %c0_10 = arith.constant 0 : index
    %25 = vector.load %arg4[%c0_9, %c0_10] : memref<32x128xf32, #tpu.memory_space<vmem>>, vector<32x128xf32>
    %cst_11 = arith.constant dense<0.000000e+00> : vector<2x128xf32>
    %26 = tpu.matmul %24, %25, %cst_11 {dimension_numbers = #tpu.dot_dimension_numbers<[1], [0], [0], [1], [0, 0, 1, 1], [], []>} : vector<2x32xf32>, vector<32x128xf32>, vector<2x128xf32> -> vector<2x128xf32>
    %c0_12 = arith.constant 0 : index
    %c0_13 = arith.constant 0 : index
    %27 = vector.load %arg5[%c0_12, %c0_13] : memref<1x128xf32, #tpu.memory_space<vmem>>, vector<1x128xf32>
    %28 = vector.broadcast %27 : vector<1x128xf32> to vector<2x128xf32>
    %29 = arith.addf %26, %28 : vector<2x128xf32>
    %c0_14 = arith.constant 0 : index
    %c0_15 = arith.constant 0 : index
    %30 = vector.load %arg6[%c0_14, %c0_15] : memref<2x128xf32, #tpu.memory_space<vmem>>, vector<2x128xf32>
    tpu.vector_store %arg6[%c0_14, %c0_15], %29 {strides = array<i32>} : memref<2x128xf32, #tpu.memory_space<vmem>>, vector<2x128xf32>,
    return
  }
  func.func @transform_0(%arg0: i32) -> (i32, i32) {
    %c0_i32 = arith.constant 0 : i32
    %c0_i32_0 = arith.constant 0 : i32
    %c0_i32_1 = arith.constant 0 : i32
    return %c0_i32, %c0_i32_0 : i32, i32
  }
  func.func @transform_1(%arg0: i32) -> (i32, i32) {
    %c0_i32 = arith.constant 0 : i32
    %c0_i32_0 = arith.constant 0 : i32
    %c0_i32_1 = arith.constant 0 : i32
    return %c0_i32, %c0_i32_0 : i32, i32
  }
  func.func @transform_2(%arg0: i32) -> (i32, i32) {
    %c0_i32 = arith.constant 0 : i32
    %c0_i32_0 = arith.constant 0 : i32
    %c0_i32_1 = arith.constant 0 : i32
    return %c0_i32, %c0_i32_0 : i32, i32
  }
  func.func @transform_3(%arg0: i32) -> (i32, i32) {
    %c0_i32 = arith.constant 0 : i32
    %c0_i32_0 = arith.constant 0 : i32
    %c0_i32_1 = arith.constant 0 : i32
    return %c0_i32, %c0_i32_0 : i32, i32
  }
  func.func @transform_4(%arg0: i32) -> (i32, i32) {
    %c0_i32 = arith.constant 0 : i32
    %c0_i32_0 = arith.constant 0 : i32
    %c0_i32_1 = arith.constant 0 : i32
    return %c0_i32, %c0_i32_0 : i32, i32
  }
  func.func @transform_5(%arg0: i32) -> (i32, i32) {
    %c0_i32 = arith.constant 0 : i32
    %c0_i32_0 = arith.constant 0 : i32
    %c0_i32_1 = arith.constant 0 : i32
    return %c0_i32, %c0_i32_0 : i32, i32
  }
}

module attributes {stable_mosaic.version = 11 : i64} {
  func.func @_attn_mlp_kernel(%arg0: i32, %arg1: i32, %arg2: memref<1x16x32xf32, #tpu.memory_space<vmem>>, %arg3: memref<1x4x16x8xbf16, #tpu.memory_space<vmem>>, %arg4: memref<1x4x16x8xbf16, #tpu.memory_space<vmem>>, %arg5: memref<1x4x16x8xbf16, #tpu.memory_space<vmem>>, %arg6: memref<32x32xbf16, #tpu.memory_space<vmem>>, %arg7: memref<1x32xf32, #tpu.memory_space<vmem>>, %arg8: memref<1x32xf32, #tpu.memory_space<vmem>>, %arg9: memref<1x32xf32, #tpu.memory_space<vmem>>, %arg10: memref<32x64xbf16, #tpu.memory_space<vmem>>, %arg11: memref<1x64xf32, #tpu.memory_space<vmem>>, %arg12: memref<64x32xbf16, #tpu.memory_space<vmem>>, %arg13: memref<1x32xf32, #tpu.memory_space<vmem>>, %arg14: memref<1x16x32xf32, #tpu.memory_space<vmem>>) attributes {dimension_semantics = [#tpu.dimension_semantics<parallel>, #tpu.dimension_semantics<parallel>], iteration_bounds = array<i64: 2, 1>, scalar_prefetch = 0 : i64, scratch_operands = 0 : i64, tpu.core_type = #tpu.core_type<tc>, window_params = [{transform_indices = @transform_0, window_bounds = array<i64: 1, 16, 32>}, {transform_indices = @transform_1, window_bounds = array<i64: 1, 4, 16, 8>}, {transform_indices = @transform_2, window_bounds = array<i64: 1, 4, 16, 8>}, {transform_indices = @transform_3, window_bounds = array<i64: 1, 4, 16, 8>}, {pipeline_mode = #tpu.pipeline_mode<synchronous>, transform_indices = @transform_4, window_bounds = array<i64: 32, 32>}, {pipeline_mode = #tpu.pipeline_mode<synchronous>, transform_indices = @transform_5, window_bounds = array<i64: 1, 32>}, {pipeline_mode = #tpu.pipeline_mode<synchronous>, transform_indices = @transform_6, window_bounds = array<i64: 1, 32>}, {pipeline_mode = #tpu.pipeline_mode<synchronous>, transform_indices = @transform_7, window_bounds = array<i64: 1, 32>}, {pipeline_mode = #tpu.pipeline_mode<synchronous>, transform_indices = @transform_8, window_bounds = array<i64: 32, 64>}, {pipeline_mode = #tpu.pipeline_mode<synchronous>, transform_indices = @transform_9, window_bounds = array<i64: 1, 64>}, {pipeline_mode = #tpu.pipeline_mode<synchronous>, transform_indices = @transform_10, window_bounds = array<i64: 64, 32>}, {pipeline_mode = #tpu.pipeline_mode<synchronous>, transform_indices = @transform_11, window_bounds = array<i64: 1, 32>}, {transform_indices = @transform_12, window_bounds = array<i64: 1, 16, 32>}]} {
    %c0 = arith.constant 0 : index
    %c0_0 = arith.constant 0 : index
    %c0_1 = arith.constant 0 : index
    %0 = vector.load %arg2[%c0, %c0_0, %c0_1] : memref<1x16x32xf32, #tpu.memory_space<vmem>>, vector<1x16x32xf32>
    %1 = vector.shape_cast %0 : vector<1x16x32xf32> to vector<16x32xf32>
    %c0_2 = arith.constant 0 : index
    %c0_3 = arith.constant 0 : index
    %c0_4 = arith.constant 0 : index
    %c0_5 = arith.constant 0 : index
    %2 = vector.load %arg3[%c0_2, %c0_3, %c0_4, %c0_5] : memref<1x4x16x8xbf16, #tpu.memory_space<vmem>>, vector<1x4x16x8xbf16>
    %3 = vector.shape_cast %2 : vector<1x4x16x8xbf16> to vector<4x16x8xbf16>
    %c0_6 = arith.constant 0 : index
    %c0_7 = arith.constant 0 : index
    %c0_8 = arith.constant 0 : index
    %c0_9 = arith.constant 0 : index
    %4 = vector.load %arg4[%c0_6, %c0_7, %c0_8, %c0_9] : memref<1x4x16x8xbf16, #tpu.memory_space<vmem>>, vector<1x4x16x8xbf16>
    %5 = vector.shape_cast %4 : vector<1x4x16x8xbf16> to vector<4x16x8xbf16>
    %c0_10 = arith.constant 0 : index
    %c0_11 = arith.constant 0 : index
    %c0_12 = arith.constant 0 : index
    %c0_13 = arith.constant 0 : index
    %6 = vector.load %arg5[%c0_10, %c0_11, %c0_12, %c0_13] : memref<1x4x16x8xbf16, #tpu.memory_space<vmem>>, vector<1x4x16x8xbf16>
    %7 = vector.shape_cast %6 : vector<1x4x16x8xbf16> to vector<4x16x8xbf16>
    "tpu.trace_start"() <{level = 10 : i32, message = "hqd,hkd->hqk"}> : () -> ()
    %cst = arith.constant dense<0.000000e+00> : vector<4x16x16xf32>
    %8 = tpu.matmul %3, %5, %cst {dimension_numbers = #tpu.dot_dimension_numbers<[2], [2], [1], [1], [0, 0, 0, 1, 1, 1], [0], [0]>} : vector<4x16x8xbf16>, vector<4x16x8xbf16>, vector<4x16x16xf32> -> vector<4x16x16xf32>
    "tpu.trace_stop"() : () -> ()
    %cst_14 = arith.constant 0.353553385 : f32
    %9 = vector.broadcast %cst_14 : f32 to vector<4x16x16xf32>
    %10 = arith.mulf %8, %9 : vector<4x16x16xf32>
    %11 = tpu.iota {dimensions = array<i32: 2>} : vector<1x1x16xi32>
    %c13_i32 = arith.constant 13 : i32
    %12 = vector.broadcast %c13_i32 : i32 to vector<1x1x16xi32>
    %13 = arith.cmpi slt, %11, %12 : vector<1x1x16xi32>
    %cst_15 = arith.constant -1.000000e+30 : f32
    %14 = vector.shape_cast %13 : vector<1x1x16xi1> to vector<1x1x16xi1>
    %15 = vector.broadcast %14 : vector<1x1x16xi1> to vector<4x16x16xi1>
    %16 = vector.broadcast %cst_15 : f32 to vector<4x16x16xf32>
    %17 = arith.select %15, %10, %16 : vector<4x16x16xi1>, vector<4x16x16xf32>
    %cst_16 = arith.constant dense<0xFF800000> : vector<4x16xf32>
    %18 = vector.multi_reduction <maximumf>, %17, %cst_16 [2] : vector<4x16x16xf32> to vector<4x16xf32>
    %19 = vector.shape_cast %18 : vector<4x16xf32> to vector<4x16x1xf32>
    %20 = vector.broadcast %19 : vector<4x16x1xf32> to vector<4x16x16xf32>
    %21 = arith.subf %17, %20 : vector<4x16x16xf32>
    %22 = math.exp %21 : vector<4x16x16xf32>
    %cst_17 = arith.constant dense<0.000000e+00> : vector<4x16xf32>
    %23 = vector.multi_reduction <add>, %22, %cst_17 [2] : vector<4x16x16xf32> to vector<4x16xf32>
    %24 = vector.shape_cast %23 : vector<4x16xf32> to vector<4x16x1xf32>
    %25 = tpu.reciprocal %24 {approx = true} : vector<4x16x1xf32> -> vector<4x16x1xf32>
    %26 = vector.broadcast %25 : vector<4x16x1xf32> to vector<4x16x16xf32>
    %27 = arith.mulf %22, %26 : vector<4x16x16xf32>
    %28 = arith.truncf %27 : vector<4x16x16xf32> to vector<4x16x16xbf16>
    "tpu.trace_start"() <{level = 10 : i32, message = "hqk,hkd->hqd"}> : () -> ()
    %cst_18 = arith.constant dense<0.000000e+00> : vector<4x16x8xf32>
    %29 = tpu.matmul %28, %7, %cst_18 {dimension_numbers = #tpu.dot_dimension_numbers<[2], [1], [1], [2], [0, 0, 0, 1, 1, 2], [0], [0]>} : vector<4x16x16xbf16>, vector<4x16x8xbf16>, vector<4x16x8xf32> -> vector<4x16x8xf32>
    "tpu.trace_stop"() : () -> ()
    %30 = vector.extract_strided_slice %29 {offsets = [0, 0, 0], sizes = [1, 16, 8], strides = [1, 1, 1]} : vector<4x16x8xf32> to vector<1x16x8xf32>
    %31 = vector.shape_cast %30 : vector<1x16x8xf32> to vector<16x8xf32>
    %32 = vector.extract_strided_slice %29 {offsets = [1, 0, 0], sizes = [1, 16, 8], strides = [1, 1, 1]} : vector<4x16x8xf32> to vector<1x16x8xf32>
    %33 = vector.shape_cast %32 : vector<1x16x8xf32> to vector<16x8xf32>
    %34 = vector.extract_strided_slice %29 {offsets = [2, 0, 0], sizes = [1, 16, 8], strides = [1, 1, 1]} : vector<4x16x8xf32> to vector<1x16x8xf32>
    %35 = vector.shape_cast %34 : vector<1x16x8xf32> to vector<16x8xf32>
    %36 = vector.extract_strided_slice %29 {offsets = [3, 0, 0], sizes = [1, 16, 8], strides = [1, 1, 1]} : vector<4x16x8xf32> to vector<1x16x8xf32>
    %37 = vector.shape_cast %36 : vector<1x16x8xf32> to vector<16x8xf32>
    %38 = tpu.concatenate %31, %33, %35, %37 in 1 : vector<16x8xf32>, vector<16x8xf32>, vector<16x8xf32>, vector<16x8xf32> -> vector<16x32xf32>
    %39 = arith.truncf %38 : vector<16x32xf32> to vector<16x32xbf16>
    %c0_19 = arith.constant 0 : index
    %c0_20 = arith.constant 0 : index
    %40 = vector.load %arg6[%c0_19, %c0_20] : memref<32x32xbf16, #tpu.memory_space<vmem>>, vector<32x32xbf16>
    %cst_21 = arith.constant dense<0.000000e+00> : vector<16x32xf32>
    %41 = tpu.matmul %39, %40, %cst_21 {dimension_numbers = #tpu.dot_dimension_numbers<[1], [0], [0], [1], [0, 0, 1, 1], [], []>} : vector<16x32xbf16>, vector<32x32xbf16>, vector<16x32xf32> -> vector<16x32xf32>
    %c0_22 = arith.constant 0 : index
    %c0_23 = arith.constant 0 : index
    %42 = vector.load %arg7[%c0_22, %c0_23] : memref<1x32xf32, #tpu.memory_space<vmem>>, vector<1x32xf32>
    %43 = vector.broadcast %42 : vector<1x32xf32> to vector<16x32xf32>
    %44 = arith.addf %41, %43 : vector<16x32xf32>
    %45 = arith.addf %1, %44 : vector<16x32xf32>
    %c0_24 = arith.constant 0 : index
    %c0_25 = arith.constant 0 : index
    %46 = vector.load %arg8[%c0_24, %c0_25] : memref<1x32xf32, #tpu.memory_space<vmem>>, vector<1x32xf32>
    %c0_26 = arith.constant 0 : index
    %c0_27 = arith.constant 0 : index
    %47 = vector.load %arg9[%c0_26, %c0_27] : memref<1x32xf32, #tpu.memory_space<vmem>>, vector<1x32xf32>
    %cst_28 = arith.constant dense<0.000000e+00> : vector<16xf32>
    %48 = vector.multi_reduction <add>, %45, %cst_28 [1] : vector<16x32xf32> to vector<16xf32>
    %49 = vector.shape_cast %48 : vector<16xf32> to vector<16x1xf32>
    %cst_29 = arith.constant 3.200000e+01 : f32
    %50 = vector.broadcast %cst_29 : f32 to vector<16x1xf32>
    %51 = arith.divf %49, %50 : vector<16x1xf32>
    %52 = vector.broadcast %51 : vector<16x1xf32> to vector<16x32xf32>
    %53 = arith.subf %45, %52 : vector<16x32xf32>
    %54 = arith.mulf %53, %53 : vector<16x32xf32>
    %cst_30 = arith.constant dense<0.000000e+00> : vector<16xf32>
    %55 = vector.multi_reduction <add>, %54, %cst_30 [1] : vector<16x32xf32> to vector<16xf32>
    %56 = vector.shape_cast %55 : vector<16xf32> to vector<16x1xf32>
    %cst_31 = arith.constant 3.200000e+01 : f32
    %57 = vector.broadcast %cst_31 : f32 to vector<16x1xf32>
    %58 = arith.divf %56, %57 : vector<16x1xf32>
    %59 = vector.broadcast %51 : vector<16x1xf32> to vector<16x32xf32>
    %60 = arith.subf %45, %59 : vector<16x32xf32>
    %cst_32 = arith.constant 9.99999974E-6 : f32
    %61 = vector.broadcast %cst_32 : f32 to vector<16x1xf32>
    %62 = arith.addf %58, %61 : vector<16x1xf32>
    %63 = math.rsqrt %62 : vector<16x1xf32>
    %64 = vector.broadcast %63 : vector<16x1xf32> to vector<16x32xf32>
    %65 = arith.mulf %60, %64 : vector<16x32xf32>
    %66 = vector.broadcast %46 : vector<1x32xf32> to vector<16x32xf32>
    %67 = arith.mulf %65, %66 : vector<16x32xf32>
    %68 = vector.broadcast %47 : vector<1x32xf32> to vector<16x32xf32>
    %69 = arith.addf %67, %68 : vector<16x32xf32>
    %70 = arith.truncf %69 : vector<16x32xf32> to vector<16x32xbf16>
    %c0_33 = arith.constant 0 : index
    %c0_34 = arith.constant 0 : index
    %71 = vector.load %arg10[%c0_33, %c0_34] : memref<32x64xbf16, #tpu.memory_space<vmem>>, vector<32x64xbf16>
    %cst_35 = arith.constant dense<0.000000e+00> : vector<16x64xf32>
    %72 = tpu.matmul %70, %71, %cst_35 {dimension_numbers = #tpu.dot_dimension_numbers<[1], [0], [0], [1], [0, 0, 1, 1], [], []>} : vector<16x32xbf16>, vector<32x64xbf16>, vector<16x64xf32> -> vector<16x64xf32>
    %c0_36 = arith.constant 0 : index
    %c0_37 = arith.constant 0 : index
    %73 = vector.load %arg11[%c0_36, %c0_37] : memref<1x64xf32, #tpu.memory_space<vmem>>, vector<1x64xf32>
    %74 = vector.broadcast %73 : vector<1x64xf32> to vector<16x64xf32>
    %75 = arith.addf %72, %74 : vector<16x64xf32>
    %cst_38 = arith.constant 5.000000e-01 : f32
    %76 = vector.broadcast %cst_38 : f32 to vector<16x64xf32>
    %77 = arith.mulf %76, %75 : vector<16x64xf32>
    %cst_39 = arith.constant 4.471500e-02 : f32
    %78 = vector.broadcast %cst_39 : f32 to vector<16x64xf32>
    %79 = arith.mulf %78, %75 : vector<16x64xf32>
    %80 = arith.mulf %79, %75 : vector<16x64xf32>
    %81 = arith.mulf %80, %75 : vector<16x64xf32>
    %82 = arith.addf %75, %81 : vector<16x64xf32>
    %cst_40 = arith.constant 0.797884583 : f32
    %83 = vector.broadcast %cst_40 : f32 to vector<16x64xf32>
    %84 = arith.mulf %83, %82 : vector<16x64xf32>
    %85 = math.tanh %84 : vector<16x64xf32>
    %cst_41 = arith.constant 1.000000e+00 : f32
    %86 = vector.broadcast %cst_41 : f32 to vector<16x64xf32>
    %87 = arith.addf %86, %85 : vector<16x64xf32>
    %88 = arith.mulf %77, %87 : vector<16x64xf32>
    %89 = arith.truncf %88 : vector<16x64xf32> to vector<16x64xbf16>
    %c0_42 = arith.constant 0 : index
    %c0_43 = arith.constant 0 : index
    %90 = vector.load %arg12[%c0_42, %c0_43] : memref<64x32xbf16, #tpu.memory_space<vmem>>, vector<64x32xbf16>
    %cst_44 = arith.constant dense<0.000000e+00> : vector<16x32xf32>
    %91 = tpu.matmul %89, %90, %cst_44 {dimension_numbers = #tpu.dot_dimension_numbers<[1], [0], [0], [1], [0, 0, 1, 1], [], []>} : vector<16x64xbf16>, vector<64x32xbf16>, vector<16x32xf32> -> vector<16x32xf32>
    %c0_45 = arith.constant 0 : index
    %c0_46 = arith.constant 0 : index
    %92 = vector.load %arg13[%c0_45, %c0_46] : memref<1x32xf32, #tpu.memory_space<vmem>>, vector<1x32xf32>
    %93 = vector.broadcast %92 : vector<1x32xf32> to vector<16x32xf32>
    %94 = arith.addf %91, %93 : vector<16x32xf32>
    %95 = arith.addf %45, %94 : vector<16x32xf32>
    %c0_47 = arith.constant 0 : index
    %c0_48 = arith.constant 0 : index
    %c0_49 = arith.constant 0 : index
    %96 = vector.load %arg14[%c0_47, %c0_48, %c0_49] : memref<1x16x32xf32, #tpu.memory_space<vmem>>, vector<1x16x32xf32>
    %97 = vector.shape_cast %96 : vector<1x16x32xf32> to vector<16x32xf32>
    %98 = vector.shape_cast %95 : vector<16x32xf32> to vector<1x16x32xf32>
    tpu.vector_store %arg14[%c0_47, %c0_48, %c0_49], %98 {strides = array<i32>} : memref<1x16x32xf32, #tpu.memory_space<vmem>>, vector<1x16x32xf32>,
    return
  }
  func.func @transform_0(%arg0: i32, %arg1: i32) -> (i32, i32, i32) {
    %c0_i32 = arith.constant 0 : i32
    %c0_i32_0 = arith.constant 0 : i32
    return %arg0, %arg1, %c0_i32 : i32, i32, i32
  }
  func.func @transform_1(%arg0: i32, %arg1: i32) -> (i32, i32, i32, i32) {
    %c0_i32 = arith.constant 0 : i32
    %c0_i32_0 = arith.constant 0 : i32
    %c0_i32_1 = arith.constant 0 : i32
    return %arg0, %c0_i32, %arg1, %c0_i32_0 : i32, i32, i32, i32
  }
  func.func @transform_2(%arg0: i32, %arg1: i32) -> (i32, i32, i32, i32) {
    %c0_i32 = arith.constant 0 : i32
    %c0_i32_0 = arith.constant 0 : i32
    %c0_i32_1 = arith.constant 0 : i32
    %c0_i32_2 = arith.constant 0 : i32
    return %arg0, %c0_i32, %c0_i32_0, %c0_i32_1 : i32, i32, i32, i32
  }
  func.func @transform_3(%arg0: i32, %arg1: i32) -> (i32, i32, i32, i32) {
    %c0_i32 = arith.constant 0 : i32
    %c0_i32_0 = arith.constant 0 : i32
    %c0_i32_1 = arith.constant 0 : i32
    %c0_i32_2 = arith.constant 0 : i32
    return %arg0, %c0_i32, %c0_i32_0, %c0_i32_1 : i32, i32, i32, i32
  }
  func.func @transform_4(%arg0: i32, %arg1: i32) -> (i32, i32) {
    %c0_i32 = arith.constant 0 : i32
    %c0_i32_0 = arith.constant 0 : i32
    %c0_i32_1 = arith.constant 0 : i32
    return %c0_i32, %c0_i32_0 : i32, i32
  }
  func.func @transform_5(%arg0: i32, %arg1: i32) -> (i32, i32) {
    %c0_i32 = arith.constant 0 : i32
    %c0_i32_0 = arith.constant 0 : i32
    %c0_i32_1 = arith.constant 0 : i32
    return %c0_i32, %c0_i32_0 : i32, i32
  }
  func.func @transform_6(%arg0: i32, %arg1: i32) -> (i32, i32) {
    %c0_i32 = arith.constant 0 : i32
    %c0_i32_0 = arith.constant 0 : i32
    %c0_i32_1 = arith.constant 0 : i32
    return %c0_i32, %c0_i32_0 : i32, i32
  }
  func.func @transform_7(%arg0: i32, %arg1: i32) -> (i32, i32) {
    %c0_i32 = arith.constant 0 : i32
    %c0_i32_0 = arith.constant 0 : i32
    %c0_i32_1 = arith.constant 0 : i32
    return %c0_i32, %c0_i32_0 : i32, i32
  }
  func.func @transform_8(%arg0: i32, %arg1: i32) -> (i32, i32) {
    %c0_i32 = arith.constant 0 : i32
    %c0_i32_0 = arith.constant 0 : i32
    %c0_i32_1 = arith.constant 0 : i32
    return %c0_i32, %c0_i32_0 : i32, i32
  }
  func.func @transform_9(%arg0: i32, %arg1: i32) -> (i32, i32) {
    %c0_i32 = arith.constant 0 : i32
    %c0_i32_0 = arith.constant 0 : i32
    %c0_i32_1 = arith.constant 0 : i32
    return %c0_i32, %c0_i32_0 : i32, i32
  }
  func.func @transform_10(%arg0: i32, %arg1: i32) -> (i32, i32) {
    %c0_i32 = arith.constant 0 : i32
    %c0_i32_0 = arith.constant 0 : i32
    %c0_i32_1 = arith.constant 0 : i32
    return %c0_i32, %c0_i32_0 : i32, i32
  }
  func.func @transform_11(%arg0: i32, %arg1: i32) -> (i32, i32) {
    %c0_i32 = arith.constant 0 : i32
    %c0_i32_0 = arith.constant 0 : i32
    %c0_i32_1 = arith.constant 0 : i32
    return %c0_i32, %c0_i32_0 : i32, i32
  }
  func.func @transform_12(%arg0: i32, %arg1: i32) -> (i32, i32, i32) {
    %c0_i32 = arith.constant 0 : i32
    %c0_i32_0 = arith.constant 0 : i32
    return %arg0, %arg1, %c0_i32 : i32, i32, i32
  }
}

</mosaic_0001>

<bundles_post_ra>
// kernel: vit_forward.7
= control target key start
LH: loop header
LB: loop body
LE: loop exit
PB: predicated region body
PF: predicated region fallthrough
CT: control target
= control target key end

     0   :  { %s601_s18 = smov 0   ;;  %s603_s19 = smov 0   ;;  %s658_s0 = inlined_call_operand.vmem [shape: f32[2,16,32], index: 0, kind: input, shape index: {}]   ;;  %s659_s1 = inlined_call_operand.vmem [shape: f32[1,32], index: 1, kind: input, shape index: {}]   ;;  %s660_s2 = inlined_call_operand.vmem [shape: f32[1,32], index: 2, kind: input, shape index: {}]   ;;  %s661_s3 = inlined_call_operand.vmem [shape: bf16[32,96], index: 3, kind: input, shape index: {}]   ;;  %s662_s4 = inlined_call_operand.vmem [shape: f32[1,96], index: 4, kind: input, shape index: {}]   ;;  %s663_s5 = inlined_call_operand.vmem [shape: bf16[2,16,96], index: 5, kind: output, shape index: {}]  }
   0x1   :  { %s605_s20 = smov 0  }
   0x2 LB: > { %s27_s21 = sadd.s32 1, %s563_s19  ;;  %p483_p0 = scmp.ge.s32.totalorder %s567_s20, 1  ;;  %s567_s20 = sphi %s605_s20, %s15_s20   ;;  %s563_s19 = sphi %s603_s19, %s665_s19   ;;  %s559_s18 = sphi %s601_s18, %s664_s18  }
   0x3   : > { %p29_p1 = scmp.ge.s32.totalorder %s27_s21, 2  ;;  %p208_p2 = scmp.lt.s32.totalorder %s567_s20, 3 }
   0x5   : > { %s667_s21 = smov (%p29_p1, %s27_s21), 0  ;;  %p209_p3 = pnand %p483_p0, %p208_p2 }
   0x6   : > { %p245_p4 = scmp.lt.s32.totalorder (!%p209_p3), %s559_s18, 1 }
   0x7   : > { %212 = sbr.rel (%p209_p3) target bundleno = 532 (0x214), region = 40 }
   0xc   : > { %s669_s18 = smov (!%p245_p4, %s559_s18), 1  ;;  %vm269_vm0 = vcmask 261120   ;;  %v539_v14 = vld [vmem:[%s661_s3 + $0x8] sm:$0xff]   ;;  %v569_v15 = vmov 0.0   ;;  %vm570_vm1 = vmmov 0   ;;  %v540_v16 = vld [vmem:[%s661_s3] sm:$0xff]  }
   0xd   : > { %s498_s22 = sshll.u32 %s669_s18, 4  ;;  %505 = vmatprep.subr.bf16.mxu0 %v569_v15  ;;  %509 = vmatprep.mubr.msk.bf16.mxu0 %vm570_vm1, %v569_v15  ;;  %v488_v25 = vld [vmem:[%s659_s1] ss:$0 sm:$0xff]  ;;  %s499_s11 = sshll.u32 %s669_s18, 3  ;;  %vm389_vm2 = vcmask 781312  }
   0xe   : > { %s252_s25 = scalar_lea.vmem %s658_s0, %s498_s22  ;;  %506 = vmatpush3.bf16.msra.mxu0 %v539_v14  ;;  %v489_v29 = vld [vmem:[%s660_s2] ss:$0 sm:$0xff]  ;;  %s262_s14 = scalar_lea.vmem %s663_s5, %s499_s11 }
   0xf   : > { %v265_v0 = vld [vmem:[%s252_s25] sm:$0xff]  ;;  %v266_v1 = vld [vmem:[%s252_s25 + $0x8] sm:$0xff]  ;;  %507 = vmatprep.subr.bf16.mxu0 %v569_v15 }
  0x10   : > { %v270_v2 = vsel %vm269_vm0, %v265_v0, 0.0  ;;  %v273_v3 = vsel %vm269_vm0, %v266_v1, 0.0  ;;  %v490_v34 = vld [vmem:[%s662_s4] ss:$0 sm:$0xff] }
  0x11   : > { %271 = vadd.xlane.f32.xlu0 %v270_v2 }
  0x12   : > { %508 = vmatpush3.bf16.msra.mxu0 %v540_v16 }
  0x15   : > { %274 = vadd.xlane.f32.xlu0 %v273_v3 }
  0x9a   : > { %v272_v4 = vpop.xlane.xlu0 %271 }
  0x9b   : > { %v277_v5 = vmul.f32 0.03125, %v272_v4 }
  0x9d   : > { %v279_v6 = vsub.f32 %v265_v0, %v277_v5 }
  0x9e   : > { %v275_v7 = vpop.xlane.xlu0 %274 }
  0x9f   : > { %v278_v8 = vmul.f32 0.03125, %v275_v7  ;;  %v281_v9 = vmul.f32 %v279_v6, %v279_v6 }
  0xa1   : > { %v280_v10 = vsub.f32 %v266_v1, %v278_v8  ;;  %v283_v11 = vsel %vm269_vm0, %v281_v9, 0.0 }
  0xa2   : > { %284 = vadd.xlane.f32.xlu1 %v283_v11 }
  0xa3   : > { %v282_v12 = vmul.f32 %v280_v10, %v280_v10 }
  0xa5   : > { %v286_v13 = vsel %vm269_vm0, %v282_v12, 0.0 }
  0xa6   : > { %287 = vadd.xlane.f32.xlu1 %v286_v13 }
 0x12b   : > { %v285_v17 = vpop.xlane.xlu1 %284 }
 0x12c   : > { %v289_v18 = vmul.f32 0.03125, %v285_v17 }
 0x12e   : > { %v291_v19 = vadd.f32 1e-05, %v289_v18 }
 0x12f   : > { %v288_v20 = vpop.xlane.xlu1 %287 }
 0x130   : > { %541 = vrsqrt.f32 %v291_v19  ;;  %v290_v21 = vmul.f32 0.03125, %v288_v20 }
 0x132   : > { %v292_v22 = vadd.f32 1e-05, %v290_v21 }
 0x134   : > { %543 = vrsqrt.f32 %v292_v22 }
 0x13d   : > { %v542_v23 = vpop.eup %541 }
 0x13e   : > { %v295_v24 = vmul.f32 %v542_v23, %v279_v6 }
 0x140   : > { %v303_v28 = vmul.f32 %v488_v25, %v295_v24 }
 0x141   : > { %v544_v26 = vpop.eup %543 }
 0x142   : > { %v296_v27 = vmul.f32 %v544_v26, %v280_v10  ;;  %v311_v31 = vadd.f32 %v489_v29, %v303_v28 }
 0x144   : > { %v304_v30 = vmul.f32 %v488_v25, %v296_v27 }
 0x146   : > { %v312_v32 = vadd.f32 %v489_v29, %v304_v30 }
 0x148   : > { %v313_v33 = vpack.c.bf16 %v312_v32, %v311_v31 }
 0x14a   : > { %510 = vmatmul.mubr.msk.bf16.vlgmr.msra.gmra.mxu0 %vm269_vm0, %v313_v33 }
 0x20a   : > { %v374_v35 = vpop.f32.mrf.mxu0 }
 0x20b   : > { %v375_v36 = vadd.f32 %v490_v34, %v374_v35 }
 0x20c   : > { %v511_v37 = vpop.f32.mrf.mxu0 }
 0x20d   : > { %v500_v38 = vpack.c.bf16 %v375_v36, %v375_v36 }
 0x20e   : > { %v377_v39 = vpop.f32.mrf.mxu0 }
 0x20f   : > { %390 = vst.msk [vmem:[%s262_s14] sm:$0xf] %vm389_vm2, %v500_v38  ;;  %v378_v40 = vadd.f32 %v490_v34, %v377_v39 }
 0x210   : > { %v512_v41 = vpop.f32.mrf.mxu0 }
 0x211   : > { %v501_v42 = vpack.c.bf16 %v378_v40, %v378_v40 }
 0x213   : > { %391 = vst.msk [vmem:[%s262_s14 + $0x4] sm:$0xf] %vm389_vm2, %v501_v42 }
 0x214 PF: > { %s15_s20 = sadd.s32 1, %s567_s20   ;;  %s664_s18 = smov %s563_s19 }
 0x215   : > { %p12_p5 = scmp.ge.s32.totalorder %s15_s20, 4   ;;  %s665_s19 = smov %s667_s21 }
 0x217   :  { %14 = sbr.rel (!%p12_p5) target bundleno = 2 (0x2), region = 70 }

// kernel: vit_forward.6
= control target key start
LH: loop header
LB: loop body
LE: loop exit
PB: predicated region body
PF: predicated region fallthrough
CT: control target
= control target key end

     0   :  { %s665_s15 = smov 0   ;;  %s743_s0 = inlined_call_operand.vmem [shape: f32[2,4,256], index: 0, kind: input, shape index: {}]   ;;  %s744_s1 = inlined_call_operand.vmem [shape: bf16[256,32], index: 1, kind: input, shape index: {}]   ;;  %s745_s2 = inlined_call_operand.vmem [shape: f32[1,32], index: 2, kind: input, shape index: {}]   ;;  %s746_s3 = inlined_call_operand.vmem [shape: f32[1,16,32], index: 3, kind: input, shape index: {}]   ;;  %s747_s4 = inlined_call_operand.vmem [shape: f32[2,16,32], index: 4, kind: output, shape index: {}]  }
   0x1 LB: > { %s540_s16 = sadd.s32 4294967295, %s637_s15   ;;  %p544_p0 = scmp.ge.s32.totalorder %s637_s15, 1  ;;  %s637_s15 = sphi %s665_s15, %s14_s15  }
   0x2   : > { %p162_p1 = scmp.lt.s32.totalorder %s637_s15, 3 }
   0x4   : > { %p163_p2 = pnand %p544_p0, %p162_p1 }
   0x5   : > { %p188_p3 = scmp.lt.s32.totalorder (!%p163_p2), %s540_s16, 1 }
   0x6   : > { %166 = sbr.rel (%p163_p2) target bundleno = 443 (0x1bb), region = 36 }
   0xb   : > { %v614_v0 = vld [vmem:[%s744_s1 + $0x78] sm:$0xff]   ;;  %v616_v2 = vld [vmem:[%s744_s1 + $0x70] sm:$0xff]   ;;  %v618_v4 = vld [vmem:[%s744_s1 + $0x68] sm:$0xff]   ;;  %s749_s16 = smov (!%p188_p3, %s540_s16), 1  ;;  %v380_v20 = vlaneseq  ;;  %v639_v25 = vmov 0.0   ;;  %vm394_vm2 = vcmask 31744  }
   0xc   : > { %v615_v1 = vld [vmem:[%s744_s1 + $0x38] sm:$0xff]   ;;  %575 = vmatprep.subr.bf16.mxu0 %v614_v0  ;;  %v617_v3 = vld [vmem:[%s744_s1 + $0x30] sm:$0xff]   ;;  %v619_v5 = vld [vmem:[%s744_s1 + $0x28] sm:$0xff]   ;;  %s573_s5 = sshll.u32 %s749_s16, 3  ;;  %vm401_vm3 = vcmask 1043456   ;;  %vm482_vm4 = vcmask 261120  }
   0xd   : > { %576 = vmatpush3.bf16.msra.mxu0 %v615_v1  ;;  %v620_v6 = vld [vmem:[%s744_s1 + $0x60] sm:$0xff]   ;;  %v622_v8 = vld [vmem:[%s744_s1 + $0x58] sm:$0xff]   ;;  %s192_s12 = scalar_lea.vmem %s743_s0, %s573_s5  ;;  %v624_v10 = vld [vmem:[%s744_s1 + $0x50] sm:$0xff]   ;;  %v384_v21 = vand.u32 127, %v380_v20  ;;  %v381_v22 = vshrl.u32 %v380_v20, 7  ;;  %s574_s5 = sshll.u32 %s749_s16, 4 }
   0xe   : > { %577 = vmatprep.subr.bf16.mxu0 %v616_v2  ;;  %v621_v7 = vld [vmem:[%s744_s1 + $0x20] sm:$0xff]   ;;  %v623_v9 = vld [vmem:[%s744_s1 + $0x18] sm:$0xff]   ;;  %v625_v13 = vld [vmem:[%s744_s1 + $0x10] sm:$0xff]   ;;  %s197_s10 = scalar_lea.vmem %s747_s4, %s574_s5 }
   0xf   : > { %v199_v11 = vld [vmem:[%s192_s12] sm:$0xff]  ;;  %v626_v15 = vld [vmem:[%s744_s1 + $0x48] sm:$0xff]   ;;  %v385_v23 = vadd.s32 1, %v384_v21  ;;  %v382_v24 = vadd.s32 8, %v381_v22 }
  0x10   : > { %v201_v12 = vcombine.high %v199_v11, %v199_v11  ;;  %v627_v16 = vld [vmem:[%s744_s1 + $0x8] sm:$0xff]   ;;  %v628_v17 = vld [vmem:[%s744_s1 + $0x40] sm:$0xff]   ;;  %v203_v19 = vpack.c.bf16 %v199_v11, %v199_v11 }
  0x11   : > { %578 = vmatpush3.bf16.msra.mxu0 %v617_v3  ;;  %v629_v18 = vld [vmem:[%s744_s1] sm:$0xff]   ;;  %vm386_vm0 = vcmp.eq.s32.totalorder %v381_v22, %v385_v23  ;;  %vm387_vm1 = vcmp.eq.s32.totalorder %v382_v24, %v385_v23  ;;  %v393_v35 = vld [vmem:[%s746_s3 + $0x8] sm:$0xff] }
  0x12   : > { %579 = vmatprep.subr.bf16.mxu0 %v618_v4  ;;  %v204_v14 = vpack.c.bf16 %v201_v12, %v201_v12  ;;  %v566_v26 = vsel %vm386_vm0, 1.0, %v639_v25  ;;  %v567_v27 = vsel %vm387_vm1, 1.0, %v639_v25  ;;  %v549_v30 = vld [vmem:[%s745_s2] ss:$0 sm:$0xff] }
  0x13   : > { %602 = vmatprep.mubr.msk.f32.mxu1 %vm394_vm2, %v566_v26  ;;  %v392_v37 = vld [vmem:[%s746_s3] sm:$0xff] }
  0x14   : > { %372 = vmatprep.mubr.bf16.mxu0 %v204_v14 }
  0x15   : > { %580 = vmatpush3.bf16.msra.mxu0 %v619_v5 }
  0x16   : > { %581 = vmatprep.subr.bf16.mxu0 %v620_v6 }
  0x19   : > { %582 = vmatpush3.bf16.msra.mxu0 %v621_v7 }
  0x1a   : > { %583 = vmatprep.subr.bf16.mxu0 %v622_v8 }
  0x1d   : > { %584 = vmatpush3.bf16.msra.mxu0 %v623_v9 }
  0x1e   : > { %585 = vmatprep.subr.bf16.mxu0 %v624_v10 }
  0x21   : > { %586 = vmatpush3.bf16.msra.mxu0 %v625_v13 }
  0x22   : > { %587 = vmatprep.subr.bf16.mxu0 %v626_v15 }
  0x25   : > { %588 = vmatpush3.bf16.msra.mxu0 %v627_v16 }
  0x26   : > { %589 = vmatprep.subr.bf16.mxu0 %v628_v17 }
  0x29   : > { %590 = vmatpush3.bf16.msra.mxu0 %v629_v18 }
  0x2c   : > { %373 = vmatmul.mubr.bf16.vlgmr.msra.gmra.mxu0 %v203_v19 }
  0xec   : > { %v591_v28 = vpop.f32.mrf.mxu0 }
  0xee   : > { %v592_v29 = vpop.f32.mrf.mxu0 }
  0xef   : > { %v593_v31 = vadd.f32 %v592_v29, %v591_v28 }
  0xf0   : > { %v594_v32 = vpop.f32.mrf.mxu0 }
  0xf1   : > { %v375_v33 = vadd.f32 %v593_v31, %v549_v30 }
  0xf2   : > { %v595_v34 = vpop.f32.mrf.mxu0 }
  0xf3   : > { %600 = vmatprep.subr.msk.mxu1 %vm401_vm3, %v375_v33 }
  0xf4   : > { %601 = vmatpush3.msk.msra.mxu1 %vm401_vm3, %v375_v33 }
  0xf5   : > { %603 = vmatmul.mubr.msk.f32.vlgmr.msra.gmra.mxu1 %vm394_vm2, %v567_v27 }
 0x1b5   : > { %v604_v36 = vpop.f32.mrf.mxu1 }
 0x1b6   : > { %v481_v38 = vadd.f32 %v604_v36, %v393_v35 }
 0x1b7   : > { %v471_v39 = vpop.f32.mrf.mxu1 }
 0x1b8   : > { %484 = vst.msk [vmem:[%s197_s10 + $0x8] sm:$0xff] %vm482_vm4, %v481_v38  ;;  %v480_v40 = vadd.f32 %v471_v39, %v392_v37 }
 0x1ba   : > { %483 = vst.msk [vmem:[%s197_s10] sm:$0xff] %vm482_vm4, %v480_v40 }
 0x1bb PF: > { %s14_s15 = sadd.s32 1, %s637_s15  }
 0x1bc   : > { %p11_p4 = scmp.ge.s32.totalorder %s14_s15, 4  }
 0x1be   :  { %13 = sbr.rel (!%p11_p4) target bundleno = 1 (0x1), region = 66 }

// kernel: vit_forward.11
= control target key start
LH: loop header
LB: loop body
LE: loop exit
PB: predicated region body
PF: predicated region fallthrough
CT: control target
= control target key end

     0   :  { %vm24_vm0 = vcmask 254976   ;;  %s260_s0 = inlined_call_operand.vmem [shape: f32[2,32], index: 0, kind: input, shape index: {}]   ;;  %s261_s1 = inlined_call_operand.vmem [shape: f32[1,32], index: 1, kind: input, shape index: {}]   ;;  %s262_s2 = inlined_call_operand.vmem [shape: f32[1,32], index: 2, kind: input, shape index: {}]   ;;  %s263_s3 = inlined_call_operand.vmem [shape: f32[32,128], index: 3, kind: input, shape index: {}]   ;;  %s264_s4 = inlined_call_operand.vmem [shape: f32[1,128], index: 4, kind: input, shape index: {}]   ;;  %s265_s5 = inlined_call_operand.hbm [shape: f32[2,128], index: 5, kind: output, shape index: {}]  }
   0x1   :  { %v21_v0 = vld [vmem:[%s260_s0] sm:$0x3] }
   0x2   :  { %10 = vsyncpa [#allocation3], 0  ;;  %v25_v1 = vsel %vm24_vm0, %v21_v0, 0.0  ;;  %v56_v7 = vld [vmem:[%s263_s3 + $0x18] sm:$0xff]  ;;  %v200_v8 = vmov 0.0   ;;  %v55_v9 = vld [vmem:[%s263_s3 + $0x10] sm:$0xff] }
   0x3   :  { %26 = vadd.xlane.f32.xlu0 %v25_v1  ;;  %162 = vmatprep.subr.mxu0 %v200_v8  ;;  %vm201_vm1 = vmmov 0   ;;  %v54_v10 = vld [vmem:[%s263_s3 + $0x8] sm:$0xff]  ;;  %v53_v11 = vld [vmem:[%s263_s3] sm:$0xff]  ;;  %vm64_vm2 = vcmask 261120   ;;  %s202_s7 = smov [#allocation2]  }
   0x4   :  { %170 = vmatprep.mubr.msk.f32.mxu0 %vm201_vm1, %v200_v8  ;;  %163 = vmatpush3.msra.mxu0 %v56_v7  ;;  %v153_v16 = vld [vmem:[%s261_s1] ss:$0 sm:$0xff]  ;;  %s145_s8 = sshll.u32 %s202_s7, 4  ;;  %s146_s8 = int_to_ptr.vmem [resolvable:$true] %s145_s8 }
   0x5   :  { %164 = vmatprep.subr.mxu0 %v200_v8  ;;  %v154_v18 = vld [vmem:[%s262_s2] ss:$0 sm:$0xff]  ;;  %s178_s1 = scalar_lea.vmem %s146_s8, 32  ;;  %p183_p1 = scmp.lt.s32.totalorder %s146_s8, %s146_s8 }
   0x6   :  { %165 = vmatpush3.msra.mxu0 %v55_v9  ;;  %v155_v21 = vld [vmem:[%s264_s4] ss:$0 sm:$0xff]  ;;  %p179_p0 = scmp.ne.s32.totalorder %s146_s8, %s178_s1  ;;  %p184_p2 = scmp.lt.s32.totalorder %s178_s1, %s178_s1 }
   0x7   :  { %166 = vmatprep.subr.mxu0 %v200_v8 }
   0x8   :  { %167 = vmatpush3.msra.mxu0 %v54_v10  ;;  %p185_p3 = por %p184_p2, %p183_p1 }
   0x9   :  { %168 = vmatprep.subr.mxu0 %v200_v8 }
   0xa   :  { %169 = vmatpush3.msra.mxu0 %v53_v11  ;;  %p186_p4 = pnand %p185_p3, %p179_p0 }
  0x8c   :  { %v27_v2 = vpop.xlane.xlu0 %26 }
  0x8d   :  { %v29_v3 = vmul.f32 0.03125, %v27_v2 }
  0x8f   :  { %v30_v4 = vsub.f32 %v21_v0, %v29_v3 }
  0x91   :  { %v31_v5 = vmul.f32 %v30_v4, %v30_v4 }
  0x93   :  { %v32_v6 = vsel %vm24_vm0, %v31_v5, 0.0 }
  0x94   :  { %33 = vadd.xlane.f32.xlu0 %v32_v6 }
 0x11d   :  { %v34_v12 = vpop.xlane.xlu0 %33 }
 0x11e   :  { %v35_v13 = vmul.f32 0.03125, %v34_v12 }
 0x120   :  { %v36_v14 = vadd.f32 1e-05, %v35_v13 }
 0x122   :  { %176 = vrsqrt.f32 %v36_v14 }
 0x12f   :  { %v177_v15 = vpop.eup %176 }
 0x130   :  { %v38_v17 = vmul.f32 %v177_v15, %v30_v4 }
 0x132   :  { %v45_v19 = vmul.f32 %v153_v16, %v38_v17 }
 0x134   :  { %v52_v20 = vadd.f32 %v154_v18, %v45_v19 }
 0x136   :  { %171 = vmatmul.mubr.msk.f32.vlgmr.msra.gmra.mxu0 %vm64_vm2, %v52_v20 }
 0x1f6   :  { %v134_v22 = vpop.f32.mrf.mxu0 }
 0x1f7   :  { %v135_v23 = vadd.f32 %v155_v21, %v134_v22 }
 0x1f8   :  { %v172_v24 = vpop.f32.mrf.mxu0 }
 0x1f9   :  { %138 = vst [vmem:[#allocation2] sm:$0x3] %v135_v23 }
 0x1fa   :  { %189 = shalt.err (!%p186_p4)
}
 0x1fb   :  { %148 = dma.vmem_to_hbm [thread:$0]  %s146_s8, 32, %s265_s5, [#allocation3]  }
 0x1fc   :  { %198 = dma.done.wait [#allocation3], 32  }
 0x1fd   :  { %199 = vsyncadd [#allocation3], 4294967264 }
 0x1fe   :  { %152 = vsyncpa [#allocation3], 1 }

// kernel: vit_forward.8
= control target key start
LH: loop header
LB: loop body
LE: loop exit
PB: predicated region body
PF: predicated region fallthrough
CT: control target
= control target key end

     0   :  { %s1909_s21 = smov 0   ;;  %s1911_s22 = smov 0   ;;  %s2100_s0 = inlined_call_operand.vmem [shape: f32[2,16,32], index: 0, kind: input, shape index: {}]   ;;  %s2101_s1 = inlined_call_operand.vmem [shape: bf16[2,4,16,8], index: 1, kind: input, shape index: {}]   ;;  %s2102_s2 = inlined_call_operand.vmem [shape: bf16[2,4,16,8], index: 2, kind: input, shape index: {}]   ;;  %s2103_s3 = inlined_call_operand.vmem [shape: bf16[2,4,16,8], index: 3, kind: input, shape index: {}]   ;;  %s2104_s4 = inlined_call_operand.vmem [shape: bf16[32,32], index: 4, kind: input, shape index: {}]   ;;  %s2105_s5 = inlined_call_operand.vmem [shape: f32[1,32], index: 5, kind: input, shape index: {}]   ;;  %s2106_s6 = inlined_call_operand.vmem [shape: f32[1,32], index: 6, kind: input, shape index: {}]   ;;  %s2107_s7 = inlined_call_operand.vmem [shape: f32[1,32], index: 7, kind: input, shape index: {}]   ;;  %s2108_s8 = inlined_call_operand.vmem [shape: bf16[32,64], index: 8, kind: input, shape index: {}]   ;;  %s2109_s9 = inlined_call_operand.vmem [shape: f32[1,64], index: 9, kind: input, shape index: {}]   ;;  %s2110_s10 = inlined_call_operand.vmem [shape: bf16[64,32], index: 10, kind: input, shape index: {}]   ;;  %s2111_s11 = inlined_call_operand.vmem [shape: f32[1,32], index: 11, kind: input, shape index: {}]   ;;  %s2112_s12 = inlined_call_operand.vmem [shape: f32[2,16,32], index: 12, kind: output, shape index: {}]  }
   0x1   :  { %s1913_s23 = smov 0  }
   0x2 LB: > { %s34_s24 = sadd.s32 1, %s1833_s22  ;;  %p1554_p0 = scmp.ge.s32.totalorder %s1837_s23, 1  ;;  %s1837_s23 = sphi %s1913_s23, %s22_s23   ;;  %s1833_s22 = sphi %s1911_s22, %s2114_s22   ;;  %s1829_s21 = sphi %s1909_s21, %s2113_s21  }
   0x3   : > { %p36_p1 = scmp.ge.s32.totalorder %s34_s24, 2  ;;  %p420_p2 = scmp.lt.s32.totalorder %s1837_s23, 3 }
   0x5   : > { %s2116_s24 = smov (%p36_p1, %s34_s24), 0  ;;  %p421_p3 = pnand %p1554_p0, %p420_p2 }
   0x6   : > { %p490_p4 = scmp.lt.s32.totalorder (!%p421_p3), %s1829_s21, 1  ;;  %s1842_s26 = smov (!%p421_p3), 16  }
   0x7   : > { %424 = sbr.rel (%p421_p3) target bundleno = 1815 (0x717), region = 68  ;;  %s1843_s27 = smov (!%p421_p3), 24  }
   0xc   : > { %v1839_v0 = vmov 0.0   ;;  %vm1840_vm0 = vmmov 0   ;;  %s2118_s21 = smov (!%p490_p4, %s1829_s21), 1  ;;  %vm566_vm1 = vcmask 64512   ;;  %v793_v13 = vlaneseq }
   0xd   : > { %1635 = vmatprep.subr.bf16.mxu1 %v1839_v0  ;;  %1637 = vmatprep.mubr.msk.bf16.mxu1 %vm1840_vm0, %v1839_v0  ;;  %s1604_s25 = sshll.u32 %s2118_s21, 5  ;;  %vm806_vm3 = vcmask 130048   ;;  %vm1127_vm4 = vcmask 195584   ;;  %vm1154_vm5 = vcmask 261120   ;;  %vm1372_vm6 = vcmask 523264  }
   0xe   : > { %1647 = vmatprep.subr.bf16.mxu0 %v1839_v0  ;;  %1649 = vmatprep.mubr.msk.bf16.mxu0 %vm1840_vm0, %v1839_v0  ;;  %s513_s28 = scalar_lea.vmem %s2102_s2, %s1604_s25  ;;  %s507_s13 = scalar_lea.vmem %s2101_s1, %s1604_s25  ;;  %v794_v14 = vand.u32 127, %v793_v13 }
   0xf   : > { %v1755_v1 = vld [vmem:[%s513_s28] sm:$0xff]   ;;  %v1757_v3 = vld [vmem:[%s513_s28 + $0x10] sm:$0xff]   ;;  %v1758_v5 = vld [vmem:[%s513_s28 + $0x8] sm:$0xff]   ;;  %s1949_s16 = scalar_lea.vmem %s2103_s3, %s1604_s25  ;;  %s1841_s25 = smov 8  }
  0x10   : > { %v571_v2 = vsel %vm566_vm1, %v1755_v1, 0  ;;  %v685_v4 = vsel %vm566_vm1, %v1757_v3, 0  ;;  %v1756_v6 = vld [vmem:[%s507_s13] sm:$0xff]   ;;  %v628_v7 = vsel %vm566_vm1, %v1758_v5, 0  ;;  %v1759_v8 = vld [vmem:[%s507_s13 + $0x10] sm:$0xff]   ;;  %v1761_v9 = vld [vmem:[%s513_s28 + $0x18] sm:$0xff]  }
  0x11   : > { %1636 = vmatpush3.bf16.xpose.msra.mxu1 %v571_v2  ;;  %1648 = vmatpush3.bf16.xpose.msra.mxu0 %v685_v4  ;;  %v1760_v10 = vld [vmem:[%s507_s13 + $0x8] sm:$0xff]   ;;  %v742_v11 = vsel %vm566_vm1, %v1761_v9, 0  ;;  %v1762_v12 = vld [vmem:[%s507_s13 + $0x18] sm:$0xff]   ;;  %vm795_vm2 = vcmp.lt.s32.totalorder %v794_v14, 13  ;;  %s1603_s28 = sshll.u32 %s2118_s21, 4 }
  0x12   : > { %1641 = vmatprep.subr.bf16.mxu1 %v1839_v0  ;;  %1659 = vmatprep.subr.bf16.mxu0 %v1839_v0  ;;  %s497_s13 = scalar_lea.vmem %s2100_s0, %s1603_s28  ;;  %s527_s30 = scalar_lea.vmem %s2112_s12, %s1603_s28 }
  0x18   : > { %1638 = vmatmul.mubr.msk.bf16.vlgmr.msra.gmra.mxu1 %vm566_vm1, %v1756_v6  ;;  %1650 = vmatmul.mubr.msk.bf16.vlgmr.msra.gmra.mxu0 %vm566_vm1, %v1759_v8 }
  0x19   : > { %1642 = vmatpush3.bf16.xpose.msra.mxu1 %v628_v7  ;;  %1643 = vmatprep.mubr.msk.bf16.mxu1 %vm1840_vm0, %v1839_v0 }
  0x1a   : > { %1653 = vmatprep.subr.bf16.mxu1 %v1839_v0  ;;  %1661 = vmatprep.mubr.msk.bf16.mxu0 %vm1840_vm0, %v1839_v0 }
  0x20   : > { %1644 = vmatmul.mubr.msk.bf16.vlgmr.msra.gmra.mxu1 %vm566_vm1, %v1760_v10 }
  0x21   : > { %1654 = vmatpush3.bf16.xpose.msra.mxu1 %v742_v11  ;;  %1655 = vmatprep.mubr.msk.bf16.mxu1 %vm1840_vm0, %v1839_v0 }
  0x22   : > { %1665 = vmatprep.subr.bf16.mxu1 %v1839_v0 }
  0x28   : > { %1656 = vmatmul.mubr.msk.bf16.vlgmr.msra.gmra.mxu1 %vm566_vm1, %v1762_v12 }
  0x29   : > { %1667 = vmatprep.mubr.msk.bf16.mxu1 %vm1840_vm0, %v1839_v0 }
  0xd8   : > { %v607_v15 = vpop.f32.mrf.mxu1  ;;  %v721_v18 = vpop.f32.mrf.mxu0 }
  0xd9   : > { %v785_v16 = vmul.f32 0.35355338, %v607_v15  ;;  %v789_v20 = vmul.f32 0.35355338, %v721_v18 }
  0xda   : > { %v1639_v17 = vpop.f32.mrf.mxu1  ;;  %v1651_v23 = vpop.f32.mrf.mxu0 }
  0xdb   : > { %v798_v19 = vsel %vm795_vm2, %v785_v16, -1e+30  ;;  %v802_v28 = vsel %vm795_vm2, %v789_v20, -1e+30 }
  0xdc   : > { %v610_v21 = vpop.f32.mrf.mxu1  ;;  %v807_v22 = vsel %vm806_vm3, %v798_v19, -inf  ;;  %v724_v26 = vpop.f32.mrf.mxu0  ;;  %v819_v34 = vsel %vm806_vm3, %v802_v28, -inf }
  0xdd   : > { %v786_v24 = vmul.f32 0.35355338, %v610_v21  ;;  %808 = vmax.xlane.f32.xlu0 %v807_v22  ;;  %v790_v38 = vmul.f32 0.35355338, %v724_v26 }
  0xde   : > { %v1640_v25 = vpop.f32.mrf.mxu1  ;;  %v1652_v31 = vpop.f32.mrf.mxu0 }
  0xdf   : > { %v799_v27 = vsel %vm795_vm2, %v786_v24, -1e+30  ;;  %v803_v45 = vsel %vm795_vm2, %v790_v38, -1e+30 }
  0xe0   : > { %v664_v29 = vpop.f32.mrf.mxu1  ;;  %v810_v30 = vsel %vm806_vm3, %v799_v27, -inf  ;;  %v822_v49 = vsel %vm806_vm3, %v803_v45, -inf }
  0xe1   : > { %v787_v32 = vmul.f32 0.35355338, %v664_v29  ;;  %811 = vmax.xlane.f32.xlu0 %v810_v30 }
  0xe2   : > { %v1645_v33 = vpop.f32.mrf.mxu1 }
  0xe3   : > { %v800_v35 = vsel %vm795_vm2, %v787_v32, -1e+30  ;;  %v1763_v32 = vld [vmem:[%s1949_s16] sm:$0xff]   ;;  %v1764_v33 = vld [vmem:[%s1949_s16 + $0x8] sm:$0xff]  }
  0xe4   : > { %v667_v36 = vpop.f32.mrf.mxu1  ;;  %v813_v37 = vsel %vm806_vm3, %v800_v35, -inf  ;;  %1660 = vmatpush3.bf16.msra.mxu0 %v1763_v32  ;;  %1666 = vmatpush3.bf16.msra.mxu1 %v1764_v33 }
  0xe5   : > { %v788_v39 = vmul.f32 0.35355338, %v667_v36  ;;  %820 = vmax.xlane.f32.xlu0 %v819_v34  ;;  %814 = vmax.xlane.f32.xlu1 %v813_v37 }
  0xe6   : > { %v1646_v40 = vpop.f32.mrf.mxu1  ;;  %1671 = vmatprep.subr.bf16.mxu0 %v1839_v0  ;;  %1677 = vmatprep.subr.bf16.mxu1 %v1839_v0 }
  0xe7   : > { %v801_v41 = vsel %vm795_vm2, %v788_v39, -1e+30 }
  0xe8   : > { %v778_v42 = vpop.f32.mrf.mxu1  ;;  %v816_v43 = vsel %vm806_vm3, %v801_v41, -inf }
  0xe9   : > { %v791_v44 = vmul.f32 0.35355338, %v778_v42  ;;  %817 = vmax.xlane.f32.xlu1 %v816_v43 }
  0xea   : > { %v1657_v46 = vpop.f32.mrf.mxu1 }
  0xeb   : > { %v804_v47 = vsel %vm795_vm2, %v791_v44, -1e+30  ;;  %v1765_v46 = vld [vmem:[%s1949_s16 + $0x10] sm:$0xff]  }
  0xec   : > { %v781_v48 = vpop.f32.mrf.mxu1  ;;  %v825_v50 = vsel %vm806_vm3, %v804_v47, -inf }
  0xed   : > { %v792_v51 = vmul.f32 0.35355338, %v781_v48  ;;  %823 = vmax.xlane.f32.xlu1 %v822_v49  ;;  %826 = vmax.xlane.f32.xlu0 %v825_v50 }
  0xee   : > { %v1658_v52 = vpop.f32.mrf.mxu1 }
  0xef   : > { %v805_v53 = vsel %vm795_vm2, %v792_v51, -1e+30 }
  0xf0   : > { %v828_v54 = vsel %vm806_vm3, %v805_v53, -inf }
  0xf1   : > { %829 = vmax.xlane.f32.xlu1 %v828_v54 }
 0x166   : > { %v809_v55 = vpop.xlane.xlu0 %808 }
 0x167   : > { %v831_v56 = vsub.f32 %v798_v19, %v809_v55 }
 0x169   : > { %v839_v57 = vmul.f32 1.442695, %v831_v56 }
 0x16a   : > { %v812_v58 = vpop.xlane.xlu0 %811 }
 0x16b   : > { %1775 = vpow2.f32 %v839_v57  ;;  %v832_v59 = vsub.f32 %v799_v27, %v812_v58 }
 0x16d   : > { %v841_v60 = vmul.f32 1.442695, %v832_v59 }
 0x16e   : > { %v821_v61 = vpop.xlane.xlu0 %820  ;;  %v815_v62 = vpop.xlane.xlu1 %814 }
 0x16f   : > { %1777 = vpow2.f32 %v841_v60  ;;  %v835_v63 = vsub.f32 %v802_v28, %v821_v61  ;;  %v833_v1 = vsub.f32 %v800_v35, %v815_v62 }
 0x171   : > { %v843_v2 = vmul.f32 1.442695, %v833_v1  ;;  %v847_v3 = vmul.f32 1.442695, %v835_v63 }
 0x172   : > { %v818_v4 = vpop.xlane.xlu1 %817 }
 0x173   : > { %v834_v5 = vsub.f32 %v801_v41, %v818_v4  ;;  %1779 = vpow2.f32 %v843_v2 }
 0x174   : > { %1781 = vpow2.f32 %v847_v3 }
 0x175   : > { %v845_v6 = vmul.f32 1.442695, %v834_v5  ;;  %v1767_v5 = vld [vmem:[%s2104_s4 + $0x8] sm:$0xff]  }
 0x176   : > { %v824_v7 = vpop.xlane.xlu1 %823  ;;  %v827_v8 = vpop.xlane.xlu0 %826 }
 0x177   : > { %1783 = vpow2.f32 %v845_v6  ;;  %v836_v9 = vsub.f32 %v803_v45, %v824_v7  ;;  %v837_v10 = vsub.f32 %v804_v47, %v827_v8  ;;  %v1768_v8 = vld [vmem:[%s2104_s4] sm:$0xff]  }
 0x178   : > { %v1776_v11 = vpop.eup %1775 }
 0x179   : > { %v849_v12 = vmul.f32 1.442695, %v836_v9  ;;  %v851_v13 = vmul.f32 1.442695, %v837_v10  ;;  %v855_v14 = vsel %vm806_vm3, %v1776_v11, 0.0 }
 0x17a   : > { %856 = vadd.xlane.f32.xlu0 %v855_v14  ;;  %v830_v15 = vpop.xlane.xlu1 %829 }
 0x17b   : > { %1785 = vpow2.f32 %v849_v12  ;;  %v838_v16 = vsub.f32 %v805_v53, %v830_v15  ;;  %v1766_v53 = vld [vmem:[%s1949_s16 + $0x18] sm:$0xff]  }
 0x17c   : > { %v1778_v17 = vpop.eup %1777  ;;  %1787 = vpow2.f32 %v851_v13 }
 0x17d   : > { %v853_v18 = vmul.f32 1.442695, %v838_v16  ;;  %v858_v19 = vsel %vm806_vm3, %v1778_v17, 0.0 }
 0x17e   : > { %859 = vadd.xlane.f32.xlu1 %v858_v19 }
 0x17f   : > { %1789 = vpow2.f32 %v853_v18 }
 0x180   : > { %v1780_v20 = vpop.eup %1779 }
 0x181   : > { %v861_v21 = vsel %vm806_vm3, %v1780_v20, 0.0  ;;  %v1782_v22 = vpop.eup %1781 }
 0x182   : > { %862 = vadd.xlane.f32.xlu0 %v861_v21  ;;  %v867_v25 = vsel %vm806_vm3, %v1782_v22, 0.0 }
 0x184   : > { %v1784_v23 = vpop.eup %1783 }
 0x185   : > { %v864_v24 = vsel %vm806_vm3, %v1784_v23, 0.0 }
 0x186   : > { %865 = vadd.xlane.f32.xlu1 %v864_v24  ;;  %868 = vadd.xlane.f32.xlu0 %v867_v25 }
 0x188   : > { %v1786_v26 = vpop.eup %1785 }
 0x189   : > { %v1788_v27 = vpop.eup %1787  ;;  %v870_v28 = vsel %vm806_vm3, %v1786_v26, 0.0 }
 0x18a   : > { %v873_v29 = vsel %vm806_vm3, %v1788_v27, 0.0  ;;  %871 = vadd.xlane.f32.xlu1 %v870_v28 }
 0x18b   : > { %874 = vadd.xlane.f32.xlu0 %v873_v29 }
 0x18c   : > { %v1790_v30 = vpop.eup %1789 }
 0x18d   : > { %v876_v31 = vsel %vm806_vm3, %v1790_v30, 0.0 }
 0x18e   : > { %877 = vadd.xlane.f32.xlu1 %v876_v31 }
 0x203   : > { %v857_v34 = vpop.xlane.xlu0 %856 }
 0x204   : > { %1791 = vrcp.f32 %v857_v34 }
 0x207   : > { %v860_v35 = vpop.xlane.xlu1 %859 }
 0x208   : > { %1793 = vrcp.f32 %v860_v35 }
 0x20b   : > { %v863_v36 = vpop.xlane.xlu0 %862 }
 0x20c   : > { %1795 = vrcp.f32 %v863_v36 }
 0x20f   : > { %v866_v37 = vpop.xlane.xlu1 %865  ;;  %v869_v38 = vpop.xlane.xlu0 %868 }
 0x210   : > { %1797 = vrcp.f32 %v866_v37 }
 0x211   : > { %1799 = vrcp.f32 %v869_v38  ;;  %v1792_v39 = vpop.eup %1791  ;;  %v1585_v38 = vld [vmem:[%s2105_s5] ss:$0 sm:$0xff] }
 0x212   : > { %v887_v43 = vmul.f32 %v1792_v39, %v1776_v11  ;;  %v530_v39 = vld [vmem:[%s497_s13] sm:$0xff] }
 0x213   : > { %v872_v40 = vpop.xlane.xlu1 %871 }
 0x214   : > { %v875_v41 = vpop.xlane.xlu0 %874  ;;  %1801 = vrcp.f32 %v872_v40 }
 0x215   : > { %v1794_v42 = vpop.eup %1793  ;;  %1803 = vrcp.f32 %v875_v41 }
 0x216   : > { %v888_v44 = vmul.f32 %v1794_v42, %v1778_v17 }
 0x217   : > { %v878_v45 = vpop.xlane.xlu1 %877 }
 0x218   : > { %1805 = vrcp.f32 %v878_v45  ;;  %v895_v47 = vpack.c.bf16 %v888_v44, %v887_v43  ;;  %v531_v44 = vld [vmem:[%s497_s13 + $0x8] sm:$0xff] }
 0x219   : > { %v1796_v48 = vpop.eup %1795 }
 0x21a   : > { %1662 = vmatmul.mubr.msk.bf16.vlgmr.msra.gmra.mxu0 %vm806_vm3, %v895_v47  ;;  %v889_v50 = vmul.f32 %v1796_v48, %v1780_v20 }
 0x21b   : > { %1672 = vmatpush3.bf16.msra.mxu0 %v1765_v46  ;;  %1673 = vmatprep.mubr.msk.bf16.mxu0 %vm1840_vm0, %v1839_v0 }
 0x21c   : > { %1683 = vmatprep.subr.bf16.mxu0 %v1839_v0 }
 0x21d   : > { %v1798_v49 = vpop.eup %1797 }
 0x21e   : > { %v890_v51 = vmul.f32 %v1798_v49, %v1784_v23  ;;  %v1800_v52 = vpop.eup %1799 }
 0x21f   : > { %v891_v56 = vmul.f32 %v1800_v52, %v1782_v22 }
 0x220   : > { %v896_v54 = vpack.c.bf16 %v890_v51, %v889_v50 }
 0x221   : > { %v1802_v55 = vpop.eup %1801 }
 0x222   : > { %1668 = vmatmul.mubr.msk.bf16.vlgmr.msra.gmra.mxu1 %vm806_vm3, %v896_v54  ;;  %v892_v57 = vmul.f32 %v1802_v55, %v1786_v26  ;;  %v1804_v58 = vpop.eup %1803 }
 0x223   : > { %1678 = vmatpush3.bf16.msra.mxu1 %v1766_v53  ;;  %1679 = vmatprep.mubr.msk.bf16.mxu1 %vm1840_vm0, %v1839_v0  ;;  %v893_v61 = vmul.f32 %v1804_v58, %v1788_v27 }
 0x224   : > { %v897_v59 = vpack.c.bf16 %v892_v57, %v891_v56  ;;  %1691 = vmatprep.subr.bf16.mxu1 %v1839_v0 }
 0x225   : > { %v1806_v60 = vpop.eup %1805 }
 0x226   : > { %1674 = vmatmul.mubr.msk.bf16.vlgmr.msra.gmra.mxu0 %vm806_vm3, %v897_v59  ;;  %v894_v62 = vmul.f32 %v1806_v60, %v1790_v30 }
 0x227   : > { %1687 = vmatprep.mubr.msk.bf16.mxu0 %vm1840_vm0, %v1839_v0  ;;  %1684 = vmatpush3.bf16.msra.mxu0 %v1767_v5 }
 0x228   : > { %v898_v63 = vpack.c.bf16 %v894_v62, %v893_v61  ;;  %1685 = vmatprep.subr.bf16.mxu0 %v1839_v0  ;;  %v1769_v61 = vld [vmem:[%s2108_s8 + $0x8] sm:$0xff]   ;;  %v1770_v62 = vld [vmem:[%s2108_s8] sm:$0xff]  }
 0x22a   : > { %1680 = vmatmul.mubr.msk.bf16.vlgmr.msra.gmra.mxu1 %vm806_vm3, %v898_v63 }
 0x22b   : > { %1695 = vmatprep.mubr.msk.bf16.mxu1 %vm1840_vm0, %v1839_v0  ;;  %1686 = vmatpush3.bf16.msra.mxu0 %v1768_v8  ;;  %v1589_v8 = vld [vmem:[%s2106_s6] ss:$0 sm:$0xff] }
 0x22c   : > { %1699 = vmatprep.subr.bf16.mxu0 %v1839_v0  ;;  %1692 = vmatpush3.bf16.msra.mxu1 %v1769_v61 }
 0x22d   : > { %1693 = vmatprep.subr.bf16.mxu1 %v1839_v0 }
 0x230   : > { %1694 = vmatpush3.bf16.msra.mxu1 %v1770_v62 }
 0x2da   : > { %v942_v1 = vpop.f32.mrf.mxu0 }
 0x2dc   : > { %v1663_v2 = vpop.f32.mrf.mxu0 }
 0x2de   : > { %v945_v3 = vpop.f32.mrf.mxu0 }
 0x2e0   : > { %v1664_v4 = vpop.f32.mrf.mxu0 }
 0x2e2   : > { %v992_v6 = vpop.f32.mrf.mxu1 }
 0x2e4   : > { %v1669_v7 = vpop.f32.mrf.mxu1 }
 0x2e6   : > { %v995_v9 = vpop.f32.mrf.mxu1  ;;  %v1042_v10 = vpop.f32.mrf.mxu0 }
 0x2e7   : > { %v1740_v11 = vpack.i.bf16 %v995_v9, %v992_v6 }
 0x2e8   : > { %v1670_v12 = vpop.f32.mrf.mxu1  ;;  %v1675_v13 = vpop.f32.mrf.mxu0 }
 0x2e9   : > { %1741 = vrot.lane.b32.xlu0 %v1740_v11, %s1841_s25  ;;  %v1590_v12 = vld [vmem:[%s2107_s7] ss:$0 sm:$0xff] }
 0x2ea   : > { %v1045_v14 = vpop.f32.mrf.mxu0  ;;  %v1092_v15 = vpop.f32.mrf.mxu1 }
 0x2eb   : > { %v1745_v16 = vpack.i.bf16 %v1045_v14, %v1042_v10 }
 0x2ec   : > { %v1676_v17 = vpop.f32.mrf.mxu0  ;;  %v1681_v18 = vpop.f32.mrf.mxu1 }
 0x2ed   : > { %1746 = vrot.lane.b32.xlu1 %v1745_v16, %s1842_s26  ;;  %v1771_v17 = vld [vmem:[%s2110_s10 + $0x18] sm:$0xff]   ;;  %v1772_v18 = vld [vmem:[%s2110_s10 + $0x10] sm:$0xff]  }
 0x2ee   : > { %v1095_v19 = vpop.f32.mrf.mxu1 }
 0x2ef   : > { %v1750_v20 = vpack.i.bf16 %v1095_v19, %v1092_v15  ;;  %v1773_v19 = vld [vmem:[%s2110_s10 + $0x8] sm:$0xff]  }
 0x2f0   : > { %v1682_v21 = vpop.f32.mrf.mxu1 }
 0x2f1   : > { %1751 = vrot.lane.b32.xlu1 %v1750_v20, %s1843_s27  ;;  %v1774_v20 = vld [vmem:[%s2110_s10] sm:$0xff]  }
 0x2f2   : > { %v1591_v21 = vld [vmem:[%s2109_s9] ss:$0 sm:$0xff] }
 0x35b   : > { %v1742_v22 = vpop.permute.xlu0 %1741 }
 0x35c   : > { %v1744_v24 = vunpack.i.h.bf16 %v1742_v22  ;;  %v1743_v25 = vunpack.i.l.bf16 %v1742_v22 }
 0x35e   : > { %v1124_v29 = vsel %vm566_vm1, %v945_v3, %v1744_v24  ;;  %v1123_v30 = vsel %vm566_vm1, %v942_v1, %v1743_v25 }
 0x35f   : > { %v1747_v23 = vpop.permute.xlu1 %1746 }
 0x360   : > { %v1749_v26 = vunpack.i.h.bf16 %v1747_v23  ;;  %v1748_v27 = vunpack.i.l.bf16 %v1747_v23 }
 0x362   : > { %v1125_v33 = vsel %vm806_vm3, %v1123_v30, %v1748_v27  ;;  %v1126_v34 = vsel %vm806_vm3, %v1124_v29, %v1749_v26 }
 0x363   : > { %v1752_v28 = vpop.permute.xlu1 %1751 }
 0x364   : > { %v1754_v31 = vunpack.i.h.bf16 %v1752_v28  ;;  %v1753_v32 = vunpack.i.l.bf16 %v1752_v28 }
 0x366   : > { %v1129_v35 = vsel %vm1127_vm4, %v1126_v34, %v1754_v31  ;;  %v1128_v36 = vsel %vm1127_vm4, %v1125_v33, %v1753_v32 }
 0x367   : > { %v1130_v37 = vpack.c.bf16 %v1129_v35, %v1128_v36 }
 0x369   : > { %1688 = vmatmul.mubr.msk.bf16.vlgmr.msra.gmra.mxu0 %vm1154_vm5, %v1130_v37 }
 0x36a   : > { %1707 = vmatprep.mubr.msk.bf16.mxu0 %vm1840_vm0, %v1839_v0  ;;  %1700 = vmatpush3.bf16.msra.mxu0 %v1771_v17 }
 0x36b   : > { %1701 = vmatprep.subr.bf16.mxu0 %v1839_v0 }
 0x36e   : > { %1702 = vmatpush3.bf16.msra.mxu0 %v1772_v18 }
 0x36f   : > { %1703 = vmatprep.subr.bf16.mxu0 %v1839_v0 }
 0x372   : > { %1704 = vmatpush3.bf16.msra.mxu0 %v1773_v19 }
 0x373   : > { %1705 = vmatprep.subr.bf16.mxu0 %v1839_v0 }
 0x376   : > { %1706 = vmatpush3.bf16.msra.mxu0 %v1774_v20 }
 0x429   : > { %v1192_v40 = vpop.f32.mrf.mxu0 }
 0x42a   : > { %v1193_v41 = vadd.f32 %v1585_v38, %v1192_v40 }
 0x42b   : > { %v1689_v42 = vpop.f32.mrf.mxu0 }
 0x42c   : > { %v2035_v43 = vadd.f32 %v1193_v41, %v530_v39 }
 0x42d   : > { %v1195_v45 = vpop.f32.mrf.mxu0 }
 0x42e   : > { %v1196_v46 = vadd.f32 %v1585_v38, %v1195_v45  ;;  %v1203_v47 = vsel %vm1154_vm5, %v2035_v43, 0.0 }
 0x42f   : > { %v1690_v48 = vpop.f32.mrf.mxu0  ;;  %1204 = vadd.xlane.f32.xlu1 %v1203_v47  ;;  %v1595_v47 = vld [vmem:[%s2111_s11] ss:$0 sm:$0xff] }
 0x430   : > { %v2039_v49 = vadd.f32 %v1196_v46, %v531_v44 }
 0x432   : > { %v1206_v50 = vsel %vm1154_vm5, %v2039_v49, 0.0 }
 0x433   : > { %1207 = vadd.xlane.f32.xlu0 %v1206_v50 }
 0x4b8   : > { %v1205_v51 = vpop.xlane.xlu1 %1204 }
 0x4b9   : > { %v1210_v52 = vmul.f32 0.03125, %v1205_v51 }
 0x4bb   : > { %v1212_v53 = vsub.f32 %v2035_v43, %v1210_v52 }
 0x4bc   : > { %v1208_v54 = vpop.xlane.xlu0 %1207 }
 0x4bd   : > { %v1211_v55 = vmul.f32 0.03125, %v1208_v54  ;;  %v1214_v56 = vmul.f32 %v1212_v53, %v1212_v53 }
 0x4bf   : > { %v1213_v57 = vsub.f32 %v2039_v49, %v1211_v55  ;;  %v1216_v58 = vsel %vm1154_vm5, %v1214_v56, 0.0 }
 0x4c0   : > { %1217 = vadd.xlane.f32.xlu0 %v1216_v58 }
 0x4c1   : > { %v1215_v59 = vmul.f32 %v1213_v57, %v1213_v57 }
 0x4c3   : > { %v1219_v60 = vsel %vm1154_vm5, %v1215_v59, 0.0 }
 0x4c4   : > { %1220 = vadd.xlane.f32.xlu0 %v1219_v60 }
 0x549   : > { %v1218_v63 = vpop.xlane.xlu0 %1217 }
 0x54a   : > { %v1222_v1 = vmul.f32 0.03125, %v1218_v63 }
 0x54c   : > { %v1224_v2 = vadd.f32 1e-05, %v1222_v1 }
 0x54d   : > { %v1221_v3 = vpop.xlane.xlu0 %1220 }
 0x54e   : > { %1807 = vrsqrt.f32 %v1224_v2  ;;  %v1223_v4 = vmul.f32 0.03125, %v1221_v3 }
 0x550   : > { %v1225_v5 = vadd.f32 1e-05, %v1223_v4 }
 0x552   : > { %1809 = vrsqrt.f32 %v1225_v5 }
 0x55b   : > { %v1808_v6 = vpop.eup %1807 }
 0x55c   : > { %v1228_v7 = vmul.f32 %v1808_v6, %v1212_v53 }
 0x55e   : > { %v1236_v11 = vmul.f32 %v1589_v8, %v1228_v7 }
 0x55f   : > { %v1810_v9 = vpop.eup %1809 }
 0x560   : > { %v1229_v10 = vmul.f32 %v1810_v9, %v1213_v57  ;;  %v1244_v14 = vadd.f32 %v1590_v12, %v1236_v11 }
 0x562   : > { %v1237_v13 = vmul.f32 %v1589_v8, %v1229_v10 }
 0x564   : > { %v1245_v15 = vadd.f32 %v1590_v12, %v1237_v13 }
 0x566   : > { %v1246_v16 = vpack.c.bf16 %v1245_v15, %v1244_v14 }
 0x568   : > { %1696 = vmatmul.mubr.msk.bf16.vlgmr.msra.gmra.mxu1 %vm1154_vm5, %v1246_v16 }
 0x628   : > { %v1307_v22 = vpop.f32.mrf.mxu1 }
 0x629   : > { %v1308_v23 = vadd.f32 %v1591_v21, %v1307_v22 }
 0x62a   : > { %v1697_v24 = vpop.f32.mrf.mxu1 }
 0x62b   : > { %v1316_v25 = vmul.f32 0.044715, %v1308_v23  ;;  %v1314_v40 = vmul.f32 0.5, %v1308_v23 }
 0x62c   : > { %v1310_v26 = vpop.f32.mrf.mxu1 }
 0x62d   : > { %v1318_v27 = vmul.f32 %v1316_v25, %v1308_v23  ;;  %v1311_v28 = vadd.f32 %v1591_v21, %v1310_v26 }
 0x62e   : > { %v1698_v29 = vpop.f32.mrf.mxu1 }
 0x62f   : > { %v1320_v30 = vmul.f32 %v1318_v27, %v1308_v23  ;;  %v1317_v31 = vmul.f32 0.044715, %v1311_v28  ;;  %v1315_v41 = vmul.f32 0.5, %v1311_v28 }
 0x631   : > { %v1322_v32 = vadd.f32 %v1320_v30, %v1308_v23  ;;  %v1319_v33 = vmul.f32 %v1317_v31, %v1311_v28 }
 0x633   : > { %v1324_v34 = vmul.f32 0.7978846, %v1322_v32  ;;  %v1321_v35 = vmul.f32 %v1319_v33, %v1311_v28 }
 0x635   : > { %1811 = vtanh.f32 %v1324_v34  ;;  %v1323_v0 = vadd.f32 %v1321_v35, %v1311_v28 }
 0x637   : > { %v1325_v36 = vmul.f32 0.7978846, %v1323_v0 }
 0x639   : > { %1813 = vtanh.f32 %v1325_v36 }
 0x642   : > { %v1812_v37 = vpop.eup %1811 }
 0x643   : > { %v1328_v38 = vadd.f32 1.0, %v1812_v37 }
 0x645   : > { %v1330_v44 = vmul.f32 %v1328_v38, %v1314_v40 }
 0x646   : > { %v1814_v39 = vpop.eup %1813 }
 0x647   : > { %v1329_v42 = vadd.f32 1.0, %v1814_v39 }
 0x649   : > { %v1331_v45 = vmul.f32 %v1329_v42, %v1315_v41 }
 0x64b   : > { %v1332_v46 = vpack.c.bf16 %v1331_v45, %v1330_v44 }
 0x64d   : > { %1708 = vmatmul.mubr.msk.bf16.vlgmr.msra.gmra.mxu0 %vm1372_vm6, %v1332_v46 }
 0x70d   : > { %v1410_v48 = vpop.f32.mrf.mxu0 }
 0x70e   : > { %v1411_v50 = vadd.f32 %v1595_v47, %v1410_v48 }
 0x70f   : > { %v1709_v51 = vpop.f32.mrf.mxu0 }
 0x710   : > { %v1417_v52 = vadd.f32 %v1411_v50, %v2035_v43 }
 0x711   : > { %v1413_v53 = vpop.f32.mrf.mxu0 }
 0x712   : > { %1419 = vst.msk [vmem:[%s527_s30] sm:$0xff] %vm1154_vm5, %v1417_v52  ;;  %v1414_v54 = vadd.f32 %v1595_v47, %v1413_v53 }
 0x713   : > { %v1710_v55 = vpop.f32.mrf.mxu0 }
 0x714   : > { %v1418_v56 = vadd.f32 %v1414_v54, %v2039_v49 }
 0x716   : > { %1420 = vst.msk [vmem:[%s527_s30 + $0x8] sm:$0xff] %vm1154_vm5, %v1418_v56 }
 0x717 PF: > { %s22_s23 = sadd.s32 1, %s1837_s23   ;;  %s2113_s21 = smov %s1833_s22 }
 0x718   : > { %p19_p5 = scmp.ge.s32.totalorder %s22_s23, 4   ;;  %s2114_s22 = smov %s2116_s24 }
 0x71a   :  { %21 = sbr.rel (!%p19_p5) target bundleno = 2 (0x2), region = 107 }

</bundles_post_ra>
